<compile_context>
chip_gen: v7x
topology: tpu7x:2x2x1
jax: 0.10.0
libtpu: 0.0.40
codegen_flags: <defaults>
</compile_context>

<pallas_src>
import jax
import jax.numpy as jnp
from jax.experimental import pallas as pl
from jax.experimental.pallas import tpu as pltpu

TEMP = 0.01        # concrete-selector temperature (module default temp=0.01)
FOLD = 128         # original rows folded into one lane-dense output row


def _selector_kernel(x_ref, w_ref, o_ref):
    """One grid step of the streaming selector reduce.

    x_ref: (tn, FOLD*D)  -- FOLD original rows folded into the lane axis
    w_ref: (FOLD*D, FOLD)-- block-diagonal softmax weights (p on each block)
    o_ref: (tn, FOLD)    -- o[i, j] = dot(x_row[FOLD*i + j], p)
    """
    o_ref[...] = jnp.dot(
        x_ref[...], w_ref[...], preferred_element_type=jnp.float32
    ).astype(o_ref.dtype)


def feature_selector_mega_forward(x, logits_all, *, tile_rows=256):
    """x: (B, N, D); logits_all: (target_number, D). Returns (B, N, 3).

    Only logits_all[0] participates in the returned value (matching the
    reference forward, where sub_gates[0] is concatenated three times; the
    other sub-gate evaluations are discarded and side-effect free).

    `tile_rows` = folded rows per grid step; each folded row is FOLD=128
    original rows (128*D lanes).  Default 256 -> ~4 MiB f32 input per step;
    sweep upward on v5e/v6e, keep the VMEM budget in mind on v7x (64 MiB).
    """
    B, N, D = x.shape
    M = B * N
    compute_dtype = x.dtype

    # --- Hoisted softmax: one tiny (D,) vector shared by every grid step. ---
    p = jax.nn.softmax(logits_all[0].astype(jnp.float32) / TEMP)  # (D,)

    x2d = x.reshape(M, D)                     # free reshape, native dtype

    Mmain = (M // FOLD) * FOLD                # rows the kernel handles
    if Mmain == 0:
        # Degenerate tiny input: not worth a kernel launch.
        y = (x2d.astype(jnp.float32) @ p).astype(compute_dtype)
    else:
        Mf = Mmain // FOLD                    # folded row count
        sub = 16 if compute_dtype == jnp.bfloat16 else 8
        if Mf <= tile_rows:
            tn = Mf                           # single block == full extent
        else:
            tn = max(sub, (tile_rows // sub) * sub)

        # Lane-dense fold: contiguous (free) reshape; no pad, no dtype copy.
        xf = (x2d if Mmain == M else x2d[:Mmain]).reshape(Mf, FOLD * D)

        # Block-diagonal weights: W[j*D + d, j] = p[d]  =>  out[i, j] = <row[FOLD*i+j], p>
        w = jnp.kron(jnp.eye(FOLD, dtype=jnp.float32),
                     p.reshape(D, 1)).astype(compute_dtype)        # (FOLD*D, FOLD)

        itemsize = jnp.dtype(compute_dtype).itemsize
        est = 2 * (tn * FOLD * D + FOLD * D * FOLD + tn * FOLD) * itemsize
        # Generous headroom, but capped so tile sweeps stay v7x-safe (64 MiB phys).
        vmem_limit = int(min(max(2 * est, 32 << 20), 48 << 20))

        yf = pl.pallas_call(
            _selector_kernel,
            out_shape=jax.ShapeDtypeStruct((Mf, FOLD), compute_dtype),
            grid_spec=pltpu.PrefetchScalarGridSpec(
                num_scalar_prefetch=0,
                grid=(pl.cdiv(Mf, tn),),      # ragged last block masked by Pallas
                in_specs=[
                    pl.BlockSpec((tn, FOLD * D), lambda i: (i, 0)),   # lane-dense x tile
                    pl.BlockSpec((FOLD * D, FOLD), lambda i: (0, 0)), # resident weights
                ],
                out_specs=pl.BlockSpec((tn, FOLD), lambda i: (i, 0)), # lane-dense output
            ),
            compiler_params=pltpu.CompilerParams(
                dimension_semantics=("parallel",),   # lets megacore/v7x split across TCs
                vmem_limit_bytes=vmem_limit,
            ),
        )(xf, w)

        y_main = yf.reshape(Mmain)            # unfold preserves original row order
        if Mmain == M:
            y = y_main
        else:
            # <= FOLD-1 tail rows: negligible wrapper einsum instead of padding x.
            y_tail = (x2d[Mmain:].astype(jnp.float32) @ p).astype(compute_dtype)
            y = jnp.concatenate([y_main, y_tail], axis=0)

    # torch.cat((g0(x), g0(x), g0(x)), dim=2): replicate once, in the wrapper.
    y = y.reshape(B, N, 1)
    return jnp.broadcast_to(y, (B, N, 3))


def _reference_forward(x, logits_all):
    """Pure-JAX reference of the same semantics for a correctness check."""
    p = jax.nn.softmax(logits_all[0].astype(jnp.float32) / TEMP)       # (D,)
    y = jnp.einsum("bnd,d->bn", x.astype(jnp.float32), p,
                   precision=jax.lax.Precision.HIGHEST)[..., None]     # (B, N, 1)
    return jnp.concatenate([y, y, y], axis=2).astype(x.dtype)          # (B, N, 3)


if __name__ == "__main__":
    # Small shapes consistent with the module (input_dim=32, batch=2).
    # N chosen so the run exercises: multi-step grid, ragged last block
    # (Mf=25 folded rows, tile=8), and the <128-row tail path (M % 128 = 16).
    B, N, D = 2, 1608, 32
    target_number = 4

    key = jax.random.PRNGKey(0)
    kx, kl = jax.random.split(key)
    x = jax.random.normal(kx, (B, N, D), dtype=jnp.float32)
    # Deterministic synthetic parameters for the target_number sub-gates
    # (ConcreteEncoder logits, output_dim=1 each). Only index 0 is used in forward.
    logits_all = 0.1 * jax.random.normal(kl, (target_number, D), dtype=jnp.float32)

    fwd = jax.jit(feature_selector_mega_forward, static_argnames=("tile_rows",))
    out = fwd(x, logits_all, tile_rows=8)
    out = jax.block_until_ready(out)

    ref = _reference_forward(x, logits_all)
    assert out.shape == (B, N, 3)
    # Gate is near-one-hot (temp=0.01), so this tolerance comfortably catches any
    # structural error (wrong row/feature) while tolerating MXU pass precision.
    max_err = float(jnp.max(jnp.abs(out - ref)))
    assert jnp.allclose(out, ref, atol=5e-3, rtol=5e-3), f"mismatch vs reference (max err {max_err})"

    # TODO(synk): ConcreteEncoder source not provided; its forward is modeled as
    # x @ softmax(logits/temp) (deterministic eval path, no Gumbel sampling).
    print("KERNEL_OK")
</pallas_src>

<mosaic_0001>
module attributes {stable_mosaic.version = 11 : i64} {
  func.func @_selector_kernel(%arg0: i32, %arg1: memref<8x4096xf32, #tpu.memory_space<vmem>>, %arg2: memref<4096x128xf32, #tpu.memory_space<vmem>>, %arg3: memref<8x128xf32, #tpu.memory_space<vmem>>) attributes {dimension_semantics = [#tpu.dimension_semantics<parallel>], iteration_bounds = array<i64: 4>, scalar_prefetch = 0 : i64, scratch_operands = 0 : i64, tpu.core_type = #tpu.core_type<tc>, window_params = [{transform_indices = @transform_0, window_bounds = array<i64: 8, 4096>}, {pipeline_mode = #tpu.pipeline_mode<synchronous>, transform_indices = @transform_1, window_bounds = array<i64: 4096, 128>}, {transform_indices = @transform_2, window_bounds = array<i64: 8, 128>}]} {
    %c0 = arith.constant 0 : index
    %c0_0 = arith.constant 0 : index
    %0 = vector.load %arg1[%c0, %c0_0] : memref<8x4096xf32, #tpu.memory_space<vmem>>, vector<8x4096xf32>
    %c0_1 = arith.constant 0 : index
    %c0_2 = arith.constant 0 : index
    %1 = vector.load %arg2[%c0_1, %c0_2] : memref<4096x128xf32, #tpu.memory_space<vmem>>, vector<4096x128xf32>
    %cst = arith.constant dense<0.000000e+00> : vector<8x128xf32>
    %2 = tpu.matmul %0, %1, %cst {dimension_numbers = #tpu.dot_dimension_numbers<[1], [0], [0], [1], [0, 0, 1, 1], [], []>} : vector<8x4096xf32>, vector<4096x128xf32>, vector<8x128xf32> -> vector<8x128xf32>
    %c0_3 = arith.constant 0 : index
    %c0_4 = arith.constant 0 : index
    %3 = vector.load %arg3[%c0_3, %c0_4] : memref<8x128xf32, #tpu.memory_space<vmem>>, vector<8x128xf32>
    tpu.vector_store %arg3[%c0_3, %c0_4], %2 {strides = array<i32>} : memref<8x128xf32, #tpu.memory_space<vmem>>, vector<8x128xf32>,
    return
  }
  func.func @transform_0(%arg0: i32) -> (i32, i32) {
    %c0_i32 = arith.constant 0 : i32
    %c0_i32_0 = arith.constant 0 : i32
    return %arg0, %c0_i32 : i32, i32
  }
  func.func @transform_1(%arg0: i32) -> (i32, i32) {
    %c0_i32 = arith.constant 0 : i32
    %c0_i32_0 = arith.constant 0 : i32
    %c0_i32_1 = arith.constant 0 : i32
    return %c0_i32, %c0_i32_0 : i32, i32
  }
  func.func @transform_2(%arg0: i32) -> (i32, i32) {
    %c0_i32 = arith.constant 0 : i32
    %c0_i32_0 = arith.constant 0 : i32
    return %arg0, %c0_i32 : i32, i32
  }
}

</mosaic_0001>

<bundles_post_ra>
// kernel: feature_selector_mega_forward.1
= control target key start
LH: loop header
LB: loop body
LE: loop exit
PB: predicated region body
PF: predicated region fallthrough
CT: control target
= control target key end

     0   :  { %s2974_s9 = smov 0   ;;  %s4575_s0 = inlined_call_operand.vmem [shape: f32[25,4096], index: 0, kind: input, shape index: {}]   ;;  %s4576_s1 = inlined_call_operand.vmem [shape: f32[4096,128], index: 1, kind: input, shape index: {}]   ;;  %s4577_s2 = inlined_call_operand.vmem [shape: f32[25,128], index: 2, kind: output, shape index: {}]  }
   0x1 LB: > { %s1860_s10 = sadd.s32 4294967295, %s2957_s9   ;;  %p1864_p0 = scmp.ge.s32.totalorder %s2957_s9, 1  ;;  %s2957_s9 = sphi %s2974_s9, %s12_s9  }
   0x2   : > { %p112_p1 = scmp.lt.s32.totalorder %s2957_s9, 5 }
   0x4   : > { %p113_p2 = pnand %p1864_p0, %p112_p1 }
   0x5   : > { %v190_v0 = vld [vmem:[%s4576_s1 + $0x80] sm:$0xff] (!%p113_p2)  ;;  %v191_v1 = vld [vmem:[%s4576_s1 + $0x88] sm:$0xff] (!%p113_p2)  ;;  %v192_v11 = vld [vmem:[%s4576_s1 + $0x90] sm:$0xff] (!%p113_p2)  ;;  %p3056_p3 = scmp.lt.s32.totalorder (!%p113_p2), %s1860_s10, 3 }
   0x6   : > { %116 = sbr.rel (%p113_p2) target bundleno = 485 (0x1e5), region = 28  ;;  %v222_v2 = vld [vmem:[%s4576_s1 + $0x180] sm:$0xff] (!%p113_p2)  ;;  %v2431_v3 = vpack.c.bf16 (!%p113_p2), %v191_v1, %v190_v0  ;;  %v223_v4 = vld [vmem:[%s4576_s1 + $0x188] sm:$0xff] (!%p113_p2)  ;;  %v193_v13 = vld [vmem:[%s4576_s1 + $0x98] sm:$0xff] (!%p113_p2) }
   0x7   : > { %v174_v5 = vld [vmem:[%s4576_s1] sm:$0xff] (!%p113_p2)  ;;  %v175_v6 = vld [vmem:[%s4576_s1 + $0x8] sm:$0xff] (!%p113_p2)  ;;  %v2463_v7 = vpack.c.bf16 (!%p113_p2), %v223_v4, %v222_v2  ;;  %v224_v14 = vld [vmem:[%s4576_s1 + $0x190] sm:$0xff] (!%p113_p2)  ;;  %v2435_v16 = vpack.c.bf16 (!%p113_p2), %v193_v13, %v192_v11 }
   0x8   : > { %v2433_v8 = vpack.c.bf16 (!%p113_p2), %v175_v6, %v174_v5  ;;  %v206_v9 = vld [vmem:[%s4576_s1 + $0x100] sm:$0xff] (!%p113_p2)  ;;  %v207_v10 = vld [vmem:[%s4576_s1 + $0x108] sm:$0xff] (!%p113_p2)  ;;  %2432 = vmatprep.subr.bf16.mxu0 (!%p113_p2), %v2431_v3  ;;  %v225_v15 = vld [vmem:[%s4576_s1 + $0x198] sm:$0xff] (!%p113_p2) }
   0x9   : > { %v2465_v12 = vpack.c.bf16 (!%p113_p2), %v207_v10, %v206_v9  ;;  %2464 = vmatprep.subr.bf16.mxu1 (!%p113_p2), %v2463_v7  ;;  %v2467_v17 = vpack.c.bf16 (!%p113_p2), %v225_v15, %v224_v14  ;;  %v176_v18 = vld [vmem:[%s4576_s1 + $0x10] sm:$0xff] (!%p113_p2)  ;;  %v177_v19 = vld [vmem:[%s4576_s1 + $0x18] sm:$0xff] (!%p113_p2)  ;;  %v194_v23 = vld [vmem:[%s4576_s1 + $0xa0] sm:$0xff] (!%p113_p2) }
   0xa   : > { %2434 = vmatpush3.bf16.msra.mxu0 (!%p113_p2), %v2433_v8  ;;  %v208_v20 = vld [vmem:[%s4576_s1 + $0x110] sm:$0xff] (!%p113_p2)  ;;  %v2437_v21 = vpack.c.bf16 (!%p113_p2), %v177_v19, %v176_v18  ;;  %v209_v22 = vld [vmem:[%s4576_s1 + $0x118] sm:$0xff] (!%p113_p2)  ;;  %v195_v24 = vld [vmem:[%s4576_s1 + $0xa8] sm:$0xff] (!%p113_p2) }
   0xb   : > { %2466 = vmatpush3.bf16.msra.mxu1 (!%p113_p2), %v2465_v12  ;;  %2436 = vmatprep.subr.bf16.mxu0 (!%p113_p2), %v2435_v16  ;;  %v2469_v25 = vpack.c.bf16 (!%p113_p2), %v209_v22, %v208_v20  ;;  %v2439_v26 = vpack.c.bf16 (!%p113_p2), %v195_v24, %v194_v23  ;;  %v226_v27 = vld [vmem:[%s4576_s1 + $0x1a0] sm:$0xff] (!%p113_p2)  ;;  %v227_v28 = vld [vmem:[%s4576_s1 + $0x1a8] sm:$0xff] (!%p113_p2)  ;;  %v196_v35 = vld [vmem:[%s4576_s1 + $0xb0] sm:$0xff] (!%p113_p2) }
   0xc   : > { %2468 = vmatprep.subr.bf16.mxu1 (!%p113_p2), %v2467_v17  ;;  %v178_v29 = vld [vmem:[%s4576_s1 + $0x20] sm:$0xff] (!%p113_p2)  ;;  %v2471_v30 = vpack.c.bf16 (!%p113_p2), %v227_v28, %v226_v27  ;;  %v179_v31 = vld [vmem:[%s4576_s1 + $0x28] sm:$0xff] (!%p113_p2)  ;;  %v197_v36 = vld [vmem:[%s4576_s1 + $0xb8] sm:$0xff] (!%p113_p2) }
   0xd   : > { %v210_v32 = vld [vmem:[%s4576_s1 + $0x120] sm:$0xff]  ;;  %v211_v33 = vld [vmem:[%s4576_s1 + $0x128] sm:$0xff]  ;;  %v2441_v34 = vpack.c.bf16 %v179_v31, %v178_v29  ;;  %v228_v37 = vld [vmem:[%s4576_s1 + $0x1b0] sm:$0xff]  ;;  %v2443_v39 = vpack.c.bf16 %v197_v36, %v196_v35  ;;  %s4580_s10 = smov (!%p3056_p3, %s1860_s10), 3 }
   0xe   : > { %2438 = vmatpush3.bf16.msra.mxu0 %v2437_v21  ;;  %v2473_v38 = vpack.c.bf16 %v211_v33, %v210_v32  ;;  %v229_v40 = vld [vmem:[%s4576_s1 + $0x1b8] sm:$0xff]  ;;  %v180_v41 = vld [vmem:[%s4576_s1 + $0x30] sm:$0xff]  ;;  %v198_v46 = vld [vmem:[%s4576_s1 + $0xc0] sm:$0xff]  ;;  %s1870_s22 = sshll.u32 %s4580_s10, 8 }
   0xf   : > { %2470 = vmatpush3.bf16.msra.mxu1 %v2469_v25  ;;  %2440 = vmatprep.subr.bf16.mxu0 %v2439_v26  ;;  %v181_v42 = vld [vmem:[%s4576_s1 + $0x38] sm:$0xff]  ;;  %v2475_v43 = vpack.c.bf16 %v229_v40, %v228_v37  ;;  %v212_v44 = vld [vmem:[%s4576_s1 + $0x130] sm:$0xff]  ;;  %v199_v47 = vld [vmem:[%s4576_s1 + $0xc8] sm:$0xff]  ;;  %s3148_s12 = scalar_lea.vmem %s4575_s0, %s1870_s22 }
  0x10   : > { %2472 = vmatprep.subr.bf16.mxu1 %v2471_v30  ;;  %v213_v45 = vld [vmem:[%s4576_s1 + $0x138] sm:$0xff]  ;;  %v230_v48 = vld [vmem:[%s4576_s1 + $0x1c0] sm:$0xff]  ;;  %v231_v49 = vld [vmem:[%s4576_s1 + $0x1c8] sm:$0xff]  ;;  %v2445_v50 = vpack.c.bf16 %v181_v42, %v180_v41  ;;  %v2447_v52 = vpack.c.bf16 %v199_v47, %v198_v46 }
  0x11   : > { %v2477_v51 = vpack.c.bf16 %v213_v45, %v212_v44  ;;  %v182_v53 = vld [vmem:[%s4576_s1 + $0x40] sm:$0xff]  ;;  %v183_v54 = vld [vmem:[%s4576_s1 + $0x48] sm:$0xff]  ;;  %v2479_v56 = vpack.c.bf16 %v231_v49, %v230_v48  ;;  %v200_v58 = vld [vmem:[%s4576_s1 + $0xd0] sm:$0xff] }
  0x12   : > { %2442 = vmatpush3.bf16.msra.mxu0 %v2441_v34  ;;  %v214_v55 = vld [vmem:[%s4576_s1 + $0x140] sm:$0xff]  ;;  %v215_v57 = vld [vmem:[%s4576_s1 + $0x148] sm:$0xff]  ;;  %v201_v59 = vld [vmem:[%s4576_s1 + $0xd8] sm:$0xff]  ;;  %v2449_v62 = vpack.c.bf16 %v183_v54, %v182_v53 }
  0x13   : > { %2474 = vmatpush3.bf16.msra.mxu1 %v2473_v38  ;;  %2444 = vmatprep.subr.bf16.mxu0 %v2443_v39  ;;  %v232_v60 = vld [vmem:[%s4576_s1 + $0x1d0] sm:$0xff]  ;;  %v233_v61 = vld [vmem:[%s4576_s1 + $0x1d8] sm:$0xff]  ;;  %v2481_v63 = vpack.c.bf16 %v215_v57, %v214_v55  ;;  %v2451_v0 = vpack.c.bf16 %v201_v59, %v200_v58  ;;  %v202_v6 = vld [vmem:[%s4576_s1 + $0xe0] sm:$0xff] }
  0x14   : > { %2476 = vmatprep.subr.bf16.mxu1 %v2475_v43  ;;  %v184_v1 = vld [vmem:[%s4576_s1 + $0x50] sm:$0xff]  ;;  %v185_v2 = vld [vmem:[%s4576_s1 + $0x58] sm:$0xff]  ;;  %v2483_v4 = vpack.c.bf16 %v233_v61, %v232_v60  ;;  %v203_v7 = vld [vmem:[%s4576_s1 + $0xe8] sm:$0xff] }
  0x15   : > { %v216_v3 = vld [vmem:[%s4576_s1 + $0x150] sm:$0xff]  ;;  %v217_v5 = vld [vmem:[%s4576_s1 + $0x158] sm:$0xff]  ;;  %v234_v8 = vld [vmem:[%s4576_s1 + $0x1e0] sm:$0xff]  ;;  %v2453_v10 = vpack.c.bf16 %v185_v2, %v184_v1  ;;  %v2455_v14 = vpack.c.bf16 %v203_v7, %v202_v6 }
  0x16   : > { %2446 = vmatpush3.bf16.msra.mxu0 %v2445_v50  ;;  %v235_v9 = vld [vmem:[%s4576_s1 + $0x1e8] sm:$0xff]  ;;  %v186_v11 = vld [vmem:[%s4576_s1 + $0x60] sm:$0xff]  ;;  %v2485_v13 = vpack.c.bf16 %v217_v5, %v216_v3  ;;  %v145_v17 = vld [vmem:[%s3148_s12 + $0x18] sm:$0xff] }
  0x17   : > { %2478 = vmatpush3.bf16.msra.mxu1 %v2477_v51  ;;  %2448 = vmatprep.subr.bf16.mxu0 %v2447_v52  ;;  %v187_v12 = vld [vmem:[%s4576_s1 + $0x68] sm:$0xff]  ;;  %v218_v15 = vld [vmem:[%s4576_s1 + $0x160] sm:$0xff]  ;;  %v2487_v18 = vpack.c.bf16 %v235_v9, %v234_v8  ;;  %v204_v20 = vld [vmem:[%s4576_s1 + $0xf0] sm:$0xff] }
  0x18   : > { %2480 = vmatprep.subr.bf16.mxu1 %v2479_v56  ;;  %v143_v16 = vld [vmem:[%s3148_s12 + $0x8] sm:$0xff]  ;;  %v205_v21 = vld [vmem:[%s4576_s1 + $0xf8] sm:$0xff]  ;;  %v236_v22 = vld [vmem:[%s4576_s1 + $0x1f0] sm:$0xff]  ;;  %820 = vmatprep.mubr.f32.mxu1 %v145_v17  ;;  %v2457_v24 = vpack.c.bf16 %v187_v12, %v186_v11 }
  0x19   : > { %v219_v19 = vld [vmem:[%s4576_s1 + $0x168] sm:$0xff]  ;;  %750 = vmatprep.mubr.f32.mxu0 %v143_v16  ;;  %v237_v23 = vld [vmem:[%s4576_s1 + $0x1f8] sm:$0xff]  ;;  %v2459_v26 = vpack.c.bf16 %v205_v21, %v204_v20  ;;  %v188_v27 = vld [vmem:[%s4576_s1 + $0x70] sm:$0xff] }
  0x1a   : > { %2450 = vmatpush3.bf16.msra.mxu0 %v2449_v62  ;;  %v2489_v25 = vpack.c.bf16 %v219_v19, %v218_v15  ;;  %v189_v28 = vld [vmem:[%s4576_s1 + $0x78] sm:$0xff]  ;;  %v220_v29 = vld [vmem:[%s4576_s1 + $0x170] sm:$0xff]  ;;  %v2491_v30 = vpack.c.bf16 %v237_v23, %v236_v22  ;;  %v254_v32 = vld [vmem:[%s4576_s1 + $0x280] sm:$0xff] }
  0x1b   : > { %2482 = vmatpush3.bf16.msra.mxu1 %v2481_v63  ;;  %2452 = vmatprep.subr.bf16.mxu0 %v2451_v0  ;;  %v221_v31 = vld [vmem:[%s4576_s1 + $0x178] sm:$0xff]  ;;  %v255_v33 = vld [vmem:[%s4576_s1 + $0x288] sm:$0xff]  ;;  %v286_v34 = vld [vmem:[%s4576_s1 + $0x380] sm:$0xff]  ;;  %v2461_v36 = vpack.c.bf16 %v189_v28, %v188_v27 }
  0x1c   : > { %2484 = vmatprep.subr.bf16.mxu1 %v2483_v4  ;;  %v287_v35 = vld [vmem:[%s4576_s1 + $0x388] sm:$0xff]  ;;  %v2493_v37 = vpack.c.bf16 %v221_v31, %v220_v29  ;;  %v2495_v38 = vpack.c.bf16 %v255_v33, %v254_v32  ;;  %v238_v39 = vld [vmem:[%s4576_s1 + $0x200] sm:$0xff]  ;;  %v256_v44 = vld [vmem:[%s4576_s1 + $0x290] sm:$0xff] }
  0x1d   : > { %v239_v40 = vld [vmem:[%s4576_s1 + $0x208] sm:$0xff]  ;;  %v270_v41 = vld [vmem:[%s4576_s1 + $0x300] sm:$0xff]  ;;  %v2527_v42 = vpack.c.bf16 %v287_v35, %v286_v34  ;;  %v257_v45 = vld [vmem:[%s4576_s1 + $0x298] sm:$0xff] }
  0x1e   : > { %2454 = vmatpush3.bf16.msra.mxu0 %v2453_v10  ;;  %v271_v43 = vld [vmem:[%s4576_s1 + $0x308] sm:$0xff]  ;;  %v288_v46 = vld [vmem:[%s4576_s1 + $0x390] sm:$0xff]  ;;  %v289_v47 = vld [vmem:[%s4576_s1 + $0x398] sm:$0xff]  ;;  %v2497_v50 = vpack.c.bf16 %v239_v40, %v238_v39  ;;  %v2499_v52 = vpack.c.bf16 %v257_v45, %v256_v44 }
  0x1f   : > { %2486 = vmatpush3.bf16.msra.mxu1 %v2485_v13  ;;  %2456 = vmatprep.subr.bf16.mxu0 %v2455_v14  ;;  %v142_v48 = vld [vmem:[%s3148_s12] sm:$0xff]  ;;  %v144_v49 = vld [vmem:[%s3148_s12 + $0x10] sm:$0xff]  ;;  %v2529_v51 = vpack.c.bf16 %v271_v43, %v270_v41  ;;  %v241_v54 = vld [vmem:[%s4576_s1 + $0x218] sm:$0xff]  ;;  %v2531_v56 = vpack.c.bf16 %v289_v47, %v288_v46 }
  0x20   : > { %2488 = vmatprep.subr.bf16.mxu1 %v2487_v18  ;;  %v240_v53 = vld [vmem:[%s4576_s1 + $0x210] sm:$0xff]  ;;  %v273_v57 = vld [vmem:[%s4576_s1 + $0x318] sm:$0xff]  ;;  %v258_v58 = vld [vmem:[%s4576_s1 + $0x2a0] sm:$0xff] }
  0x21   : > { %v272_v55 = vld [vmem:[%s4576_s1 + $0x310] sm:$0xff]  ;;  %v259_v59 = vld [vmem:[%s4576_s1 + $0x2a8] sm:$0xff]  ;;  %v290_v60 = vld [vmem:[%s4576_s1 + $0x3a0] sm:$0xff]  ;;  %v2501_v62 = vpack.c.bf16 %v241_v54, %v240_v53 }
  0x22   : > { %2458 = vmatpush3.bf16.msra.mxu0 %v2457_v24  ;;  %v291_v61 = vld [vmem:[%s4576_s1 + $0x3a8] sm:$0xff]  ;;  %v2533_v63 = vpack.c.bf16 %v273_v57, %v272_v55  ;;  %v2503_v0 = vpack.c.bf16 %v259_v59, %v258_v58  ;;  %v242_v1 = vld [vmem:[%s4576_s1 + $0x220] sm:$0xff]  ;;  %v260_v6 = vld [vmem:[%s4576_s1 + $0x2b0] sm:$0xff] }
  0x23   : > { %2490 = vmatpush3.bf16.msra.mxu1 %v2489_v25  ;;  %2460 = vmatprep.subr.bf16.mxu0 %v2459_v26  ;;  %v243_v2 = vld [vmem:[%s4576_s1 + $0x228] sm:$0xff]  ;;  %v274_v3 = vld [vmem:[%s4576_s1 + $0x320] sm:$0xff]  ;;  %v2535_v4 = vpack.c.bf16 %v291_v61, %v290_v60  ;;  %v261_v7 = vld [vmem:[%s4576_s1 + $0x2b8] sm:$0xff] }
  0x24   : > { %2492 = vmatprep.subr.bf16.mxu1 %v2491_v30  ;;  %v275_v5 = vld [vmem:[%s4576_s1 + $0x328] sm:$0xff]  ;;  %v292_v8 = vld [vmem:[%s4576_s1 + $0x3b0] sm:$0xff]  ;;  %v293_v9 = vld [vmem:[%s4576_s1 + $0x3b8] sm:$0xff]  ;;  %v2505_v10 = vpack.c.bf16 %v243_v2, %v242_v1  ;;  %v2507_v12 = vpack.c.bf16 %v261_v7, %v260_v6 }
  0x25   : > { %v2537_v11 = vpack.c.bf16 %v275_v5, %v274_v3  ;;  %v244_v13 = vld [vmem:[%s4576_s1 + $0x230] sm:$0xff]  ;;  %v245_v14 = vld [vmem:[%s4576_s1 + $0x238] sm:$0xff]  ;;  %v2539_v16 = vpack.c.bf16 %v293_v9, %v292_v8  ;;  %v262_v18 = vld [vmem:[%s4576_s1 + $0x2c0] sm:$0xff] }
  0x26   : > { %2462 = vmatpush3.bf16.msra.mxu0 %v2461_v36  ;;  %v276_v15 = vld [vmem:[%s4576_s1 + $0x330] sm:$0xff]  ;;  %v277_v17 = vld [vmem:[%s4576_s1 + $0x338] sm:$0xff]  ;;  %v263_v19 = vld [vmem:[%s4576_s1 + $0x2c8] sm:$0xff]  ;;  %v2509_v22 = vpack.c.bf16 %v245_v14, %v244_v13 }
  0x27   : > { %2494 = vmatpush3.bf16.msra.mxu1 %v2493_v37  ;;  %2496 = vmatprep.subr.bf16.mxu0 %v2495_v38  ;;  %v294_v20 = vld [vmem:[%s4576_s1 + $0x3c0] sm:$0xff]  ;;  %v295_v21 = vld [vmem:[%s4576_s1 + $0x3c8] sm:$0xff]  ;;  %v2541_v25 = vpack.c.bf16 %v277_v17, %v276_v15  ;;  %v2511_v26 = vpack.c.bf16 %v263_v19, %v262_v18  ;;  %v149_v29 = vld [vmem:[%s3148_s12 + $0x38] sm:$0xff] }
  0x28   : > { %2528 = vmatprep.subr.bf16.mxu1 %v2527_v42  ;;  %v246_v23 = vld [vmem:[%s4576_s1 + $0x240] sm:$0xff]  ;;  %v147_v24 = vld [vmem:[%s3148_s12 + $0x28] sm:$0xff]  ;;  %v2543_v30 = vpack.c.bf16 %v295_v21, %v294_v20  ;;  %v264_v32 = vld [vmem:[%s4576_s1 + $0x2d0] sm:$0xff] }
  0x29   : > { %751 = vmatmul.mubr.f32.vlgmr.msra.gmra.mrb[0].mxu0 %v142_v48  ;;  %v247_v27 = vld [vmem:[%s4576_s1 + $0x248] sm:$0xff]  ;;  %v278_v28 = vld [vmem:[%s4576_s1 + $0x340] sm:$0xff]  ;;  %v265_v33 = vld [vmem:[%s4576_s1 + $0x2d8] sm:$0xff] }
  0x2a   : > { %821 = vmatmul.mubr.f32.vlgmr.msra.gmra.mrb[0].mxu1 %v144_v49  ;;  %2498 = vmatpush3.bf16.msra.mxu0 %v2497_v50  ;;  %v279_v31 = vld [vmem:[%s4576_s1 + $0x348] sm:$0xff]  ;;  %v296_v34 = vld [vmem:[%s4576_s1 + $0x3d0] sm:$0xff]  ;;  %v297_v35 = vld [vmem:[%s4576_s1 + $0x3d8] sm:$0xff]  ;;  %v2513_v36 = vpack.c.bf16 %v247_v27, %v246_v23  ;;  %v2515_v38 = vpack.c.bf16 %v265_v33, %v264_v32 }
  0x2b   : > { %2530 = vmatpush3.bf16.msra.mxu1 %v2529_v51  ;;  %2500 = vmatprep.subr.bf16.mxu0 %v2499_v52  ;;  %v2545_v37 = vpack.c.bf16 %v279_v31, %v278_v28  ;;  %v248_v39 = vld [vmem:[%s4576_s1 + $0x250] sm:$0xff]  ;;  %v249_v40 = vld [vmem:[%s4576_s1 + $0x258] sm:$0xff]  ;;  %v2547_v42 = vpack.c.bf16 %v297_v35, %v296_v34  ;;  %v266_v44 = vld [vmem:[%s4576_s1 + $0x2e0] sm:$0xff] }
  0x2c   : > { %2532 = vmatprep.subr.bf16.mxu1 %v2531_v56  ;;  %890 = vmatprep.mubr.f32.mxu0 %v147_v24  ;;  %v280_v41 = vld [vmem:[%s4576_s1 + $0x350] sm:$0xff]  ;;  %v281_v43 = vld [vmem:[%s4576_s1 + $0x358] sm:$0xff]  ;;  %v267_v45 = vld [vmem:[%s4576_s1 + $0x2e8] sm:$0xff]  ;;  %v2517_v48 = vpack.c.bf16 %v249_v40, %v248_v39 }
  0x2d   : > { %960 = vmatprep.mubr.f32.mxu1 %v149_v29  ;;  %v298_v46 = vld [vmem:[%s4576_s1 + $0x3e0] sm:$0xff]  ;;  %v299_v47 = vld [vmem:[%s4576_s1 + $0x3e8] sm:$0xff]  ;;  %v2549_v49 = vpack.c.bf16 %v281_v43, %v280_v41  ;;  %v2519_v50 = vpack.c.bf16 %v267_v45, %v266_v44  ;;  %v268_v56 = vld [vmem:[%s4576_s1 + $0x2f0] sm:$0xff] }
  0x2e   : > { %2502 = vmatpush3.bf16.msra.mxu0 %v2501_v62  ;;  %v250_v51 = vld [vmem:[%s4576_s1 + $0x260] sm:$0xff]  ;;  %v251_v52 = vld [vmem:[%s4576_s1 + $0x268] sm:$0xff]  ;;  %v2551_v54 = vpack.c.bf16 %v299_v47, %v298_v46  ;;  %v269_v57 = vld [vmem:[%s4576_s1 + $0x2f8] sm:$0xff] }
  0x2f   : > { %2534 = vmatpush3.bf16.msra.mxu1 %v2533_v63  ;;  %2504 = vmatprep.subr.bf16.mxu0 %v2503_v0  ;;  %v282_v53 = vld [vmem:[%s4576_s1 + $0x360] sm:$0xff]  ;;  %v283_v55 = vld [vmem:[%s4576_s1 + $0x368] sm:$0xff]  ;;  %v300_v58 = vld [vmem:[%s4576_s1 + $0x3f0] sm:$0xff]  ;;  %v2521_v60 = vpack.c.bf16 %v251_v52, %v250_v51  ;;  %v2523_v62 = vpack.c.bf16 %v269_v57, %v268_v56 }
  0x30   : > { %2536 = vmatprep.subr.bf16.mxu1 %v2535_v4  ;;  %v301_v59 = vld [vmem:[%s4576_s1 + $0x3f8] sm:$0xff]  ;;  %v2553_v61 = vpack.c.bf16 %v283_v55, %v282_v53  ;;  %v252_v63 = vld [vmem:[%s4576_s1 + $0x270] sm:$0xff]  ;;  %v318_v4 = vld [vmem:[%s4576_s1 + $0x480] sm:$0xff] }
  0x31   : > { %v253_v0 = vld [vmem:[%s4576_s1 + $0x278] sm:$0xff]  ;;  %v284_v1 = vld [vmem:[%s4576_s1 + $0x370] sm:$0xff]  ;;  %v2555_v2 = vpack.c.bf16 %v301_v59, %v300_v58  ;;  %v319_v5 = vld [vmem:[%s4576_s1 + $0x488] sm:$0xff] }
  0x32   : > { %2506 = vmatpush3.bf16.msra.mxu0 %v2505_v10  ;;  %v285_v3 = vld [vmem:[%s4576_s1 + $0x378] sm:$0xff]  ;;  %v350_v6 = vld [vmem:[%s4576_s1 + $0x580] sm:$0xff]  ;;  %v351_v7 = vld [vmem:[%s4576_s1 + $0x588] sm:$0xff]  ;;  %v2525_v8 = vpack.c.bf16 %v253_v0, %v252_v63  ;;  %v2559_v10 = vpack.c.bf16 %v319_v5, %v318_v4 }
  0x33   : > { %2538 = vmatpush3.bf16.msra.mxu1 %v2537_v11  ;;  %2508 = vmatprep.subr.bf16.mxu0 %v2507_v12  ;;  %v2557_v9 = vpack.c.bf16 %v285_v3, %v284_v1  ;;  %v302_v11 = vld [vmem:[%s4576_s1 + $0x400] sm:$0xff]  ;;  %v303_v12 = vld [vmem:[%s4576_s1 + $0x408] sm:$0xff]  ;;  %v2591_v14 = vpack.c.bf16 %v351_v7, %v350_v6  ;;  %v321_v17 = vld [vmem:[%s4576_s1 + $0x498] sm:$0xff] }
  0x34   : > { %2540 = vmatprep.subr.bf16.mxu1 %v2539_v16  ;;  %v334_v13 = vld [vmem:[%s4576_s1 + $0x500] sm:$0xff]  ;;  %v335_v15 = vld [vmem:[%s4576_s1 + $0x508] sm:$0xff]  ;;  %v320_v16 = vld [vmem:[%s4576_s1 + $0x490] sm:$0xff]  ;;  %v2561_v21 = vpack.c.bf16 %v303_v12, %v302_v11 }
  0x35   : > { %v352_v18 = vld [vmem:[%s4576_s1 + $0x590] sm:$0xff]  ;;  %v353_v19 = vld [vmem:[%s4576_s1 + $0x598] sm:$0xff]  ;;  %v146_v20 = vld [vmem:[%s3148_s12 + $0x20] sm:$0xff]  ;;  %v2593_v23 = vpack.c.bf16 %v335_v15, %v334_v13  ;;  %v2563_v24 = vpack.c.bf16 %v321_v17, %v320_v16 }
  0x36   : > { %2510 = vmatpush3.bf16.msra.mxu0 %v2509_v22  ;;  %v148_v22 = vld [vmem:[%s3148_s12 + $0x30] sm:$0xff]  ;;  %v2595_v28 = vpack.c.bf16 %v353_v19, %v352_v18  ;;  %v337_v29 = vld [vmem:[%s4576_s1 + $0x518] sm:$0xff]  ;;  %v323_v31 = vld [vmem:[%s4576_s1 + $0x4a8] sm:$0xff] }
  0x37   : > { %2542 = vmatpush3.bf16.msra.mxu1 %v2541_v25  ;;  %2512 = vmatprep.subr.bf16.mxu0 %v2511_v26  ;;  %v304_v25 = vld [vmem:[%s4576_s1 + $0x410] sm:$0xff]  ;;  %v305_v26 = vld [vmem:[%s4576_s1 + $0x418] sm:$0xff]  ;;  %v354_v32 = vld [vmem:[%s4576_s1 + $0x5a0] sm:$0xff] }
  0x38   : > { %2544 = vmatprep.subr.bf16.mxu1 %v2543_v30  ;;  %v336_v27 = vld [vmem:[%s4576_s1 + $0x510] sm:$0xff]  ;;  %v322_v30 = vld [vmem:[%s4576_s1 + $0x4a0] sm:$0xff]  ;;  %v355_v33 = vld [vmem:[%s4576_s1 + $0x5a8] sm:$0xff]  ;;  %v2565_v35 = vpack.c.bf16 %v305_v26, %v304_v25 }
  0x39   : > { %v151_v34 = vld [vmem:[%s3148_s12 + $0x48] sm:$0xff]  ;;  %v306_v39 = vld [vmem:[%s4576_s1 + $0x420] sm:$0xff]  ;;  %v324_v44 = vld [vmem:[%s4576_s1 + $0x4b0] sm:$0xff] }
  0x3a   : > { %2514 = vmatpush3.bf16.msra.mxu0 %v2513_v36  ;;  %v153_v36 = vld [vmem:[%s3148_s12 + $0x58] sm:$0xff]  ;;  %v307_v40 = vld [vmem:[%s4576_s1 + $0x428] sm:$0xff]  ;;  %v338_v41 = vld [vmem:[%s4576_s1 + $0x520] sm:$0xff] }
  0x3b   : > { %2546 = vmatpush3.bf16.msra.mxu1 %v2545_v37  ;;  %2516 = vmatprep.subr.bf16.mxu0 %v2515_v38  ;;  %v2597_v37 = vpack.c.bf16 %v337_v29, %v336_v27  ;;  %v2567_v38 = vpack.c.bf16 %v323_v31, %v322_v30  ;;  %v339_v43 = vld [vmem:[%s4576_s1 + $0x528] sm:$0xff]  ;;  %v325_v45 = vld [vmem:[%s4576_s1 + $0x4b8] sm:$0xff]  ;;  %v356_v46 = vld [vmem:[%s4576_s1 + $0x5b0] sm:$0xff] }
  0x3c   : > { %2548 = vmatprep.subr.bf16.mxu1 %v2547_v42  ;;  %v2599_v42 = vpack.c.bf16 %v355_v33, %v354_v32  ;;  %v357_v47 = vld [vmem:[%s4576_s1 + $0x5b8] sm:$0xff]  ;;  %v308_v51 = vld [vmem:[%s4576_s1 + $0x430] sm:$0xff]  ;;  %v326_v56 = vld [vmem:[%s4576_s1 + $0x4c0] sm:$0xff] }
  0x3d   : > { %v309_v52 = vld [vmem:[%s4576_s1 + $0x438] sm:$0xff]  ;;  %v340_v53 = vld [vmem:[%s4576_s1 + $0x530] sm:$0xff]  ;;  %v327_v57 = vld [vmem:[%s4576_s1 + $0x4c8] sm:$0xff] }
  0x3e   : > { %2518 = vmatpush3.bf16.msra.mxu0 %v2517_v48  ;;  %v2569_v48 = vpack.c.bf16 %v307_v40, %v306_v39  ;;  %v341_v55 = vld [vmem:[%s4576_s1 + $0x538] sm:$0xff]  ;;  %v358_v58 = vld [vmem:[%s4576_s1 + $0x5c0] sm:$0xff]  ;;  %v359_v59 = vld [vmem:[%s4576_s1 + $0x5c8] sm:$0xff] }
  0x3f   : > { %2550 = vmatpush3.bf16.msra.mxu1 %v2549_v49  ;;  %2520 = vmatprep.subr.bf16.mxu0 %v2519_v50  ;;  %v2601_v49 = vpack.c.bf16 %v339_v43, %v338_v41  ;;  %v2571_v50 = vpack.c.bf16 %v325_v45, %v324_v44  ;;  %v310_v63 = vld [vmem:[%s4576_s1 + $0x440] sm:$0xff]  ;;  %v311_v0 = vld [vmem:[%s4576_s1 + $0x448] sm:$0xff]  ;;  %v328_v4 = vld [vmem:[%s4576_s1 + $0x4d0] sm:$0xff] }
  0x40   : > { %2552 = vmatprep.subr.bf16.mxu1 %v2551_v54  ;;  %v2603_v54 = vpack.c.bf16 %v357_v47, %v356_v46  ;;  %v342_v1 = vld [vmem:[%s4576_s1 + $0x540] sm:$0xff]  ;;  %v343_v3 = vld [vmem:[%s4576_s1 + $0x548] sm:$0xff]  ;;  %v329_v5 = vld [vmem:[%s4576_s1 + $0x4d8] sm:$0xff] }
  0x41   : > { %v360_v6 = vld [vmem:[%s4576_s1 + $0x5d0] sm:$0xff]  ;;  %v361_v7 = vld [vmem:[%s4576_s1 + $0x5d8] sm:$0xff]  ;;  %v330_v16 = vld [vmem:[%s4576_s1 + $0x4e0] sm:$0xff] }
  0x42   : > { %2522 = vmatpush3.bf16.msra.mxu0 %v2521_v60  ;;  %v2573_v60 = vpack.c.bf16 %v309_v52, %v308_v51  ;;  %v312_v11 = vld [vmem:[%s4576_s1 + $0x450] sm:$0xff]  ;;  %v313_v12 = vld [vmem:[%s4576_s1 + $0x458] sm:$0xff]  ;;  %v331_v17 = vld [vmem:[%s4576_s1 + $0x4e8] sm:$0xff] }
  0x43   : > { %2554 = vmatpush3.bf16.msra.mxu1 %v2553_v61  ;;  %2524 = vmatprep.subr.bf16.mxu0 %v2523_v62  ;;  %v2605_v61 = vpack.c.bf16 %v341_v55, %v340_v53  ;;  %v2575_v62 = vpack.c.bf16 %v327_v57, %v326_v56  ;;  %v344_v13 = vld [vmem:[%s4576_s1 + $0x550] sm:$0xff]  ;;  %v345_v15 = vld [vmem:[%s4576_s1 + $0x558] sm:$0xff]  ;;  %v362_v18 = vld [vmem:[%s4576_s1 + $0x5e0] sm:$0xff] }
  0x44   : > { %2556 = vmatprep.subr.bf16.mxu1 %v2555_v2  ;;  %v2607_v2 = vpack.c.bf16 %v359_v59, %v358_v58  ;;  %v363_v19 = vld [vmem:[%s4576_s1 + $0x5e8] sm:$0xff]  ;;  %v346_v25 = vld [vmem:[%s4576_s1 + $0x560] sm:$0xff]  ;;  %v333_v29 = vld [vmem:[%s4576_s1 + $0x4f8] sm:$0xff] }
  0x45   : > { %v2615_v26 = vpack.c.bf16 %v363_v19, %v362_v18  ;;  %v347_v27 = vld [vmem:[%s4576_s1 + $0x568] sm:$0xff]  ;;  %v364_v30 = vld [vmem:[%s4576_s1 + $0x5f0] sm:$0xff]  ;;  %v365_v31 = vld [vmem:[%s4576_s1 + $0x5f8] sm:$0xff] }
  0x46   : > { %2526 = vmatpush3.bf16.msra.mxu0 %v2525_v8  ;;  %v2577_v8 = vpack.c.bf16 %v311_v0, %v310_v63  ;;  %v2617_v33 = vpack.c.bf16 %v347_v27, %v346_v25  ;;  %v349_v39 = vld [vmem:[%s4576_s1 + $0x578] sm:$0xff]  ;;  %v382_v40 = vld [vmem:[%s4576_s1 + $0x680] sm:$0xff]  ;;  %v383_v41 = vld [vmem:[%s4576_s1 + $0x688] sm:$0xff] }
  0x47   : > { %2558 = vmatpush3.bf16.msra.mxu1 %v2557_v9  ;;  %2560 = vmatprep.subr.bf16.mxu0 %v2559_v10  ;;  %v2609_v9 = vpack.c.bf16 %v343_v3, %v342_v1  ;;  %v2579_v10 = vpack.c.bf16 %v329_v5, %v328_v4  ;;  %v415_v43 = vld [vmem:[%s4576_s1 + $0x788] sm:$0xff]  ;;  %v2623_v46 = vpack.c.bf16 %v383_v41, %v382_v40  ;;  %v366_v47 = vld [vmem:[%s4576_s1 + $0x600] sm:$0xff]  ;;  %v384_v52 = vld [vmem:[%s4576_s1 + $0x690] sm:$0xff] }
  0x48   : > { %2592 = vmatprep.subr.bf16.mxu1 %v2591_v14  ;;  %v2611_v14 = vpack.c.bf16 %v361_v7, %v360_v6  ;;  %v399_v51 = vld [vmem:[%s4576_s1 + $0x708] sm:$0xff]  ;;  %v385_v53 = vld [vmem:[%s4576_s1 + $0x698] sm:$0xff]  ;;  %v150_v56 = vld [vmem:[%s3148_s12 + $0x40] sm:$0xff] }
  0x49   : > { %891 = vmatmul.mubr.f32.vlgmr.msra.gmra.mrb[2].mxu0 %v146_v20  ;;  %v2581_v20 = vpack.c.bf16 %v313_v12, %v312_v11  ;;  %v417_v55 = vld [vmem:[%s4576_s1 + $0x798] sm:$0xff]  ;;  %v152_v58 = vld [vmem:[%s3148_s12 + $0x50] sm:$0xff]  ;;  %v387_v3 = vld [vmem:[%s4576_s1 + $0x6a8] sm:$0xff] }
  0x4a   : > { %2562 = vmatpush3.bf16.msra.mxu0 %v2561_v21  ;;  %961 = vmatmul.mubr.f32.vlgmr.msra.gmra.mrb[2].mxu1 %v148_v22  ;;  %v2613_v21 = vpack.c.bf16 %v345_v15, %v344_v13  ;;  %v2583_v22 = vpack.c.bf16 %v331_v17, %v330_v16  ;;  %v400_v63 = vld [vmem:[%s4576_s1 + $0x710] sm:$0xff]  ;;  %v401_v1 = vld [vmem:[%s4576_s1 + $0x718] sm:$0xff]  ;;  %v418_v4 = vld [vmem:[%s4576_s1 + $0x7a0] sm:$0xff] }
  0x4b   : > { %2594 = vmatpush3.bf16.msra.mxu1 %v2593_v23  ;;  %2564 = vmatprep.subr.bf16.mxu0 %v2563_v24  ;;  %v314_v23 = vld [vmem:[%s4576_s1 + $0x460] sm:$0xff]  ;;  %v315_v24 = vld [vmem:[%s4576_s1 + $0x468] sm:$0xff]  ;;  %v388_v16 = vld [vmem:[%s4576_s1 + $0x6b0] sm:$0xff] }
  0x4c   : > { %2596 = vmatprep.subr.bf16.mxu1 %v2595_v28  ;;  %1030 = vmatprep.mubr.f32.mxu0 %v151_v34  ;;  %v332_v28 = vld [vmem:[%s4576_s1 + $0x4f0] sm:$0xff]  ;;  %v2585_v32 = vpack.c.bf16 %v315_v24, %v314_v23  ;;  %v419_v5 = vld [vmem:[%s4576_s1 + $0x7a8] sm:$0xff]  ;;  %v370_v11 = vld [vmem:[%s4576_s1 + $0x620] sm:$0xff] }
  0x4d   : > { %1100 = vmatprep.mubr.f32.mxu1 %v153_v36  ;;  %v2587_v34 = vpack.c.bf16 %v333_v29, %v332_v28  ;;  %v317_v36 = vld [vmem:[%s4576_s1 + $0x478] sm:$0xff]  ;;  %v155_v6 = vld [vmem:[%s3148_s12 + $0x68] sm:$0xff]  ;;  %v402_v13 = vld [vmem:[%s4576_s1 + $0x720] sm:$0xff] }
  0x4e   : > { %2566 = vmatpush3.bf16.msra.mxu0 %v2565_v35  ;;  %v316_v35 = vld [vmem:[%s4576_s1 + $0x470] sm:$0xff]  ;;  %v371_v12 = vld [vmem:[%s4576_s1 + $0x628] sm:$0xff]  ;;  %v389_v17 = vld [vmem:[%s4576_s1 + $0x6b8] sm:$0xff] }
  0x4f   : > { %2598 = vmatpush3.bf16.msra.mxu1 %v2597_v37  ;;  %2568 = vmatprep.subr.bf16.mxu0 %v2567_v38  ;;  %v348_v37 = vld [vmem:[%s4576_s1 + $0x570] sm:$0xff]  ;;  %v2619_v38 = vpack.c.bf16 %v365_v31, %v364_v30  ;;  %v2589_v44 = vpack.c.bf16 %v317_v36, %v316_v35  ;;  %v403_v15 = vld [vmem:[%s4576_s1 + $0x728] sm:$0xff]  ;;  %v421_v19 = vld [vmem:[%s4576_s1 + $0x7b8] sm:$0xff] }
  0x50   : > { %2600 = vmatprep.subr.bf16.mxu1 %v2599_v42  ;;  %v414_v42 = vld [vmem:[%s4576_s1 + $0x780] sm:$0xff]  ;;  %v2621_v45 = vpack.c.bf16 %v349_v39, %v348_v37  ;;  %v420_v18 = vld [vmem:[%s4576_s1 + $0x7b0] sm:$0xff]  ;;  %v373_v24 = vld [vmem:[%s4576_s1 + $0x638] sm:$0xff] }
  0x51   : > { %v372_v23 = vld [vmem:[%s4576_s1 + $0x630] sm:$0xff]  ;;  %v405_v27 = vld [vmem:[%s4576_s1 + $0x738] sm:$0xff]  ;;  %v390_v28 = vld [vmem:[%s4576_s1 + $0x6c0] sm:$0xff] }
  0x52   : > { %2570 = vmatpush3.bf16.msra.mxu0 %v2569_v48  ;;  %v367_v48 = vld [vmem:[%s4576_s1 + $0x608] sm:$0xff]  ;;  %v404_v25 = vld [vmem:[%s4576_s1 + $0x730] sm:$0xff]  ;;  %v422_v30 = vld [vmem:[%s4576_s1 + $0x7c0] sm:$0xff] }
  0x53   : > { %2602 = vmatpush3.bf16.msra.mxu1 %v2601_v49  ;;  %2572 = vmatprep.subr.bf16.mxu0 %v2571_v50  ;;  %v398_v49 = vld [vmem:[%s4576_s1 + $0x700] sm:$0xff]  ;;  %v2655_v50 = vpack.c.bf16 %v415_v43, %v414_v42  ;;  %v2625_v57 = vpack.c.bf16 %v367_v48, %v366_v47  ;;  %v391_v29 = vld [vmem:[%s4576_s1 + $0x6c8] sm:$0xff]  ;;  %v392_v40 = vld [vmem:[%s4576_s1 + $0x6d0] sm:$0xff] }
  0x54   : > { %2604 = vmatprep.subr.bf16.mxu1 %v2603_v54  ;;  %v416_v54 = vld [vmem:[%s4576_s1 + $0x790] sm:$0xff]  ;;  %v2657_v59 = vpack.c.bf16 %v399_v51, %v398_v49  ;;  %v423_v31 = vld [vmem:[%s4576_s1 + $0x7c8] sm:$0xff]  ;;  %v374_v35 = vld [vmem:[%s4576_s1 + $0x640] sm:$0xff] }
  0x55   : > { %v2659_v0 = vpack.c.bf16 %v417_v55, %v416_v54  ;;  %v375_v36 = vld [vmem:[%s4576_s1 + $0x648] sm:$0xff]  ;;  %v406_v37 = vld [vmem:[%s4576_s1 + $0x740] sm:$0xff]  ;;  %v393_v41 = vld [vmem:[%s4576_s1 + $0x6d8] sm:$0xff] }
  0x56   : > { %2574 = vmatpush3.bf16.msra.mxu0 %v2573_v60  ;;  %v2627_v60 = vpack.c.bf16 %v385_v53, %v384_v52  ;;  %v407_v39 = vld [vmem:[%s4576_s1 + $0x748] sm:$0xff]  ;;  %v424_v42 = vld [vmem:[%s4576_s1 + $0x7d0] sm:$0xff]  ;;  %v425_v43 = vld [vmem:[%s4576_s1 + $0x7d8] sm:$0xff] }
  0x57   : > { %2606 = vmatpush3.bf16.msra.mxu1 %v2605_v61  ;;  %2576 = vmatprep.subr.bf16.mxu0 %v2575_v62  ;;  %v368_v61 = vld [vmem:[%s4576_s1 + $0x610] sm:$0xff]  ;;  %v369_v62 = vld [vmem:[%s4576_s1 + $0x618] sm:$0xff]  ;;  %v394_v52 = vld [vmem:[%s4576_s1 + $0x6e0] sm:$0xff] }
  0x58   : > { %2608 = vmatprep.subr.bf16.mxu1 %v2607_v2  ;;  %v386_v2 = vld [vmem:[%s4576_s1 + $0x6a0] sm:$0xff]  ;;  %v2629_v7 = vpack.c.bf16 %v369_v62, %v368_v61  ;;  %v376_v47 = vld [vmem:[%s4576_s1 + $0x650] sm:$0xff]  ;;  %v377_v48 = vld [vmem:[%s4576_s1 + $0x658] sm:$0xff] }
  0x59   : > { %v408_v49 = vld [vmem:[%s4576_s1 + $0x750] sm:$0xff]  ;;  %v409_v51 = vld [vmem:[%s4576_s1 + $0x758] sm:$0xff]  ;;  %v395_v53 = vld [vmem:[%s4576_s1 + $0x6e8] sm:$0xff] }
  0x5a   : > { %2578 = vmatpush3.bf16.msra.mxu0 %v2577_v8  ;;  %v157_v8 = vld [vmem:[%s3148_s12 + $0x78] sm:$0xff]  ;;  %v426_v54 = vld [vmem:[%s4576_s1 + $0x7e0] sm:$0xff]  ;;  %v427_v55 = vld [vmem:[%s4576_s1 + $0x7e8] sm:$0xff] }
  0x5b   : > { %2610 = vmatpush3.bf16.msra.mxu1 %v2609_v9  ;;  %2580 = vmatprep.subr.bf16.mxu0 %v2579_v10  ;;  %v2661_v9 = vpack.c.bf16 %v401_v1, %v400_v63  ;;  %v2631_v10 = vpack.c.bf16 %v387_v3, %v386_v2  ;;  %v410_v61 = vld [vmem:[%s4576_s1 + $0x760] sm:$0xff]  ;;  %v2679_v62 = vpack.c.bf16 %v427_v55, %v426_v54  ;;  %v411_v63 = vld [vmem:[%s4576_s1 + $0x768] sm:$0xff]  ;;  %v397_v1 = vld [vmem:[%s4576_s1 + $0x6f8] sm:$0xff] }
  0x5c   : > { %2612 = vmatprep.subr.bf16.mxu1 %v2611_v14  ;;  %v2663_v14 = vpack.c.bf16 %v419_v5, %v418_v4  ;;  %v428_v2 = vld [vmem:[%s4576_s1 + $0x7f0] sm:$0xff]  ;;  %v429_v3 = vld [vmem:[%s4576_s1 + $0x7f8] sm:$0xff]  ;;  %v2681_v5 = vpack.c.bf16 %v411_v63, %v410_v61 }
  0x5d   : > { %v484_v54 = vld [vmem:[%s4576_s1 + $0x9b0] sm:$0xff]  ;;  %v485_v55 = vld [vmem:[%s4576_s1 + $0x9b8] sm:$0xff] }
  0x5e   : > { %2582 = vmatpush3.bf16.msra.mxu0 %v2581_v20  ;;  %v2633_v20 = vpack.c.bf16 %v371_v12, %v370_v11  ;;  %v413_v11 = vld [vmem:[%s4576_s1 + $0x778] sm:$0xff]  ;;  %v446_v12 = vld [vmem:[%s4576_s1 + $0x880] sm:$0xff]  ;;  %v468_v61 = vld [vmem:[%s4576_s1 + $0x930] sm:$0xff] }
  0x5f   : > { %2614 = vmatpush3.bf16.msra.mxu1 %v2613_v21  ;;  %2584 = vmatprep.subr.bf16.mxu0 %v2583_v22  ;;  %v2665_v21 = vpack.c.bf16 %v403_v15, %v402_v13  ;;  %v2635_v22 = vpack.c.bf16 %v389_v17, %v388_v16  ;;  %v447_v13 = vld [vmem:[%s4576_s1 + $0x888] sm:$0xff]  ;;  %v469_v63 = vld [vmem:[%s4576_s1 + $0x938] sm:$0xff] }
  0x60   : > { %2616 = vmatprep.subr.bf16.mxu1 %v2615_v26  ;;  %v2667_v26 = vpack.c.bf16 %v421_v19, %v420_v18  ;;  %v479_v15 = vld [vmem:[%s4576_s1 + $0x988] sm:$0xff]  ;;  %v2687_v18 = vpack.c.bf16 %v447_v13, %v446_v12  ;;  %v430_v19 = vld [vmem:[%s4576_s1 + $0x800] sm:$0xff]  ;;  %v456_v12 = vld [vmem:[%s4576_s1 + $0x8d0] sm:$0xff] }
  0x61   : > { %v457_v13 = vld [vmem:[%s4576_s1 + $0x8d8] sm:$0xff] }
  0x62   : > { %2586 = vmatpush3.bf16.msra.mxu0 %v2585_v32  ;;  %v2637_v32 = vpack.c.bf16 %v373_v24, %v372_v23  ;;  %v463_v23 = vld [vmem:[%s4576_s1 + $0x908] sm:$0xff]  ;;  %v448_v24 = vld [vmem:[%s4576_s1 + $0x890] sm:$0xff] }
  0x63   : > { %2618 = vmatpush3.bf16.msra.mxu1 %v2617_v33  ;;  %2588 = vmatprep.subr.bf16.mxu0 %v2587_v34  ;;  %v2669_v33 = vpack.c.bf16 %v405_v27, %v404_v25  ;;  %v2639_v34 = vpack.c.bf16 %v391_v29, %v390_v28  ;;  %v449_v25 = vld [vmem:[%s4576_s1 + $0x898] sm:$0xff]  ;;  %v154_v28 = vld [vmem:[%s3148_s12 + $0x60] sm:$0xff] }
  0x64   : > { %2620 = vmatprep.subr.bf16.mxu1 %v2619_v38  ;;  %v2671_v38 = vpack.c.bf16 %v423_v31, %v422_v30  ;;  %v481_v27 = vld [vmem:[%s4576_s1 + $0x998] sm:$0xff]  ;;  %v156_v30 = vld [vmem:[%s3148_s12 + $0x70] sm:$0xff] }
  0x66   : > { %2590 = vmatpush3.bf16.msra.mxu0 %v2589_v44  ;;  %v2641_v44 = vpack.c.bf16 %v375_v36, %v374_v35  ;;  %v464_v35 = vld [vmem:[%s4576_s1 + $0x910] sm:$0xff] }
  0x67   : > { %2622 = vmatpush3.bf16.msra.mxu1 %v2621_v45  ;;  %2624 = vmatprep.subr.bf16.mxu0 %v2623_v46  ;;  %v2673_v45 = vpack.c.bf16 %v407_v39, %v406_v37  ;;  %v2643_v46 = vpack.c.bf16 %v393_v41, %v392_v40  ;;  %v465_v37 = vld [vmem:[%s4576_s1 + $0x918] sm:$0xff]  ;;  %v451_v39 = vld [vmem:[%s4576_s1 + $0x8a8] sm:$0xff]  ;;  %v482_v40 = vld [vmem:[%s4576_s1 + $0x9a0] sm:$0xff] }
  0x68   : > { %2656 = vmatprep.subr.bf16.mxu1 %v2655_v50  ;;  %v2675_v50 = vpack.c.bf16 %v425_v43, %v424_v42  ;;  %v483_v41 = vld [vmem:[%s4576_s1 + $0x9a8] sm:$0xff] }
  0x69   : > { %1031 = vmatmul.mubr.f32.vlgmr.msra.gmra.mrb[4].mxu0 %v150_v56  ;;  %v2645_v56 = vpack.c.bf16 %v377_v48, %v376_v47  ;;  %v159_v42 = vld [vmem:[%s3148_s12 + $0x88] sm:$0xff]  ;;  %v434_v47 = vld [vmem:[%s4576_s1 + $0x820] sm:$0xff] }
  0x6a   : > { %2626 = vmatpush3.bf16.msra.mxu0 %v2625_v57  ;;  %1101 = vmatmul.mubr.f32.vlgmr.msra.gmra.mrb[4].mxu1 %v152_v58  ;;  %v2677_v57 = vpack.c.bf16 %v409_v51, %v408_v49  ;;  %v2647_v58 = vpack.c.bf16 %v395_v53, %v394_v52  ;;  %v435_v48 = vld [vmem:[%s4576_s1 + $0x828] sm:$0xff]  ;;  %v466_v49 = vld [vmem:[%s4576_s1 + $0x920] sm:$0xff]  ;;  %v452_v52 = vld [vmem:[%s4576_s1 + $0x8b0] sm:$0xff] }
  0x6b   : > { %2658 = vmatpush3.bf16.msra.mxu1 %v2657_v59  ;;  %2628 = vmatprep.subr.bf16.mxu0 %v2627_v60  ;;  %v378_v59 = vld [vmem:[%s4576_s1 + $0x660] sm:$0xff]  ;;  %v379_v60 = vld [vmem:[%s4576_s1 + $0x668] sm:$0xff]  ;;  %v453_v53 = vld [vmem:[%s4576_s1 + $0x8b8] sm:$0xff] }
  0x6c   : > { %2660 = vmatprep.subr.bf16.mxu1 %v2659_v0  ;;  %1170 = vmatprep.mubr.f32.mxu0 %v155_v6  ;;  %v396_v0 = vld [vmem:[%s4576_s1 + $0x6f0] sm:$0xff]  ;;  %v2649_v4 = vpack.c.bf16 %v379_v60, %v378_v59  ;;  %v467_v51 = vld [vmem:[%s4576_s1 + $0x928] sm:$0xff]  ;;  %v437_v60 = vld [vmem:[%s4576_s1 + $0x838] sm:$0xff] }
  0x6d   : > { %1240 = vmatprep.mubr.f32.mxu1 %v157_v8  ;;  %v2651_v6 = vpack.c.bf16 %v397_v1, %v396_v0  ;;  %v381_v8 = vld [vmem:[%s4576_s1 + $0x678] sm:$0xff]  ;;  %v436_v59 = vld [vmem:[%s4576_s1 + $0x830] sm:$0xff]  ;;  %v454_v0 = vld [vmem:[%s4576_s1 + $0x8c0] sm:$0xff] }
  0x6e   : > { %2630 = vmatpush3.bf16.msra.mxu0 %v2629_v7  ;;  %v380_v7 = vld [vmem:[%s4576_s1 + $0x670] sm:$0xff]  ;;  %v455_v1 = vld [vmem:[%s4576_s1 + $0x8c8] sm:$0xff] }
  0x6f   : > { %2662 = vmatpush3.bf16.msra.mxu1 %v2661_v9  ;;  %2632 = vmatprep.subr.bf16.mxu0 %v2631_v10  ;;  %v412_v9 = vld [vmem:[%s4576_s1 + $0x770] sm:$0xff]  ;;  %v2683_v10 = vpack.c.bf16 %v429_v3, %v428_v2  ;;  %v2653_v16 = vpack.c.bf16 %v381_v8, %v380_v7  ;;  %v486_v2 = vld [vmem:[%s4576_s1 + $0x9c0] sm:$0xff]  ;;  %v487_v3 = vld [vmem:[%s4576_s1 + $0x9c8] sm:$0xff] }
  0x70   : > { %2664 = vmatprep.subr.bf16.mxu1 %v2663_v14  ;;  %v478_v14 = vld [vmem:[%s4576_s1 + $0x980] sm:$0xff]  ;;  %v2685_v17 = vpack.c.bf16 %v413_v11, %v412_v9  ;;  %v439_v8 = vld [vmem:[%s4576_s1 + $0x848] sm:$0xff] }
  0x71   : > { %v438_v7 = vld [vmem:[%s4576_s1 + $0x840] sm:$0xff]  ;;  %v471_v11 = vld [vmem:[%s4576_s1 + $0x948] sm:$0xff] }
  0x72   : > { %2634 = vmatpush3.bf16.msra.mxu0 %v2633_v20  ;;  %v431_v20 = vld [vmem:[%s4576_s1 + $0x808] sm:$0xff]  ;;  %v470_v9 = vld [vmem:[%s4576_s1 + $0x940] sm:$0xff] }
  0x73   : > { %2666 = vmatpush3.bf16.msra.mxu1 %v2665_v21  ;;  %2636 = vmatprep.subr.bf16.mxu0 %v2635_v22  ;;  %v462_v21 = vld [vmem:[%s4576_s1 + $0x900] sm:$0xff]  ;;  %v2719_v22 = vpack.c.bf16 %v479_v15, %v478_v14  ;;  %v2689_v29 = vpack.c.bf16 %v431_v20, %v430_v19  ;;  %v488_v14 = vld [vmem:[%s4576_s1 + $0x9d0] sm:$0xff]  ;;  %v489_v15 = vld [vmem:[%s4576_s1 + $0x9d8] sm:$0xff] }
  0x74   : > { %2668 = vmatprep.subr.bf16.mxu1 %v2667_v26  ;;  %v480_v26 = vld [vmem:[%s4576_s1 + $0x990] sm:$0xff]  ;;  %v2721_v31 = vpack.c.bf16 %v463_v23, %v462_v21  ;;  %v441_v20 = vld [vmem:[%s4576_s1 + $0x858] sm:$0xff] }
  0x75   : > { %v2723_v36 = vpack.c.bf16 %v481_v27, %v480_v26  ;;  %v440_v19 = vld [vmem:[%s4576_s1 + $0x850] sm:$0xff]  ;;  %v473_v23 = vld [vmem:[%s4576_s1 + $0x958] sm:$0xff]  ;;  %v490_v26 = vld [vmem:[%s4576_s1 + $0x9e0] sm:$0xff] }
  0x76   : > { %2638 = vmatpush3.bf16.msra.mxu0 %v2637_v32  ;;  %v2691_v32 = vpack.c.bf16 %v449_v25, %v448_v24  ;;  %v472_v21 = vld [vmem:[%s4576_s1 + $0x950] sm:$0xff]  ;;  %v458_v24 = vld [vmem:[%s4576_s1 + $0x8e0] sm:$0xff]  ;;  %v459_v25 = vld [vmem:[%s4576_s1 + $0x8e8] sm:$0xff] }
  0x77   : > { %2670 = vmatpush3.bf16.msra.mxu1 %v2669_v33  ;;  %2640 = vmatprep.subr.bf16.mxu0 %v2639_v34  ;;  %v432_v33 = vld [vmem:[%s4576_s1 + $0x810] sm:$0xff]  ;;  %v433_v34 = vld [vmem:[%s4576_s1 + $0x818] sm:$0xff]  ;;  %v491_v27 = vld [vmem:[%s4576_s1 + $0x9e8] sm:$0xff] }
  0x78   : > { %2672 = vmatprep.subr.bf16.mxu1 %v2671_v38  ;;  %v450_v38 = vld [vmem:[%s4576_s1 + $0x8a0] sm:$0xff]  ;;  %v2693_v43 = vpack.c.bf16 %v433_v34, %v432_v33  ;;  %v2743_v34 = vpack.c.bf16 %v491_v27, %v490_v26  ;;  %v548_v26 = vld [vmem:[%s4576_s1 + $0xbb0] sm:$0xff]  ;;  %v549_v27 = vld [vmem:[%s4576_s1 + $0xbb8] sm:$0xff] }
  0x79   : > { %v474_v33 = vld [vmem:[%s4576_s1 + $0x960] sm:$0xff] }
  0x7a   : > { %2642 = vmatpush3.bf16.msra.mxu0 %v2641_v44  ;;  %v161_v44 = vld [vmem:[%s3148_s12 + $0x98] sm:$0xff] }
  0x7b   : > { %2674 = vmatpush3.bf16.msra.mxu1 %v2673_v45  ;;  %2644 = vmatprep.subr.bf16.mxu0 %v2643_v46  ;;  %v2725_v45 = vpack.c.bf16 %v465_v37, %v464_v35  ;;  %v2695_v46 = vpack.c.bf16 %v451_v39, %v450_v38  ;;  %v475_v35 = vld [vmem:[%s4576_s1 + $0x968] sm:$0xff]  ;;  %v461_v37 = vld [vmem:[%s4576_s1 + $0x8f8] sm:$0xff]  ;;  %v492_v38 = vld [vmem:[%s4576_s1 + $0x9f0] sm:$0xff] }
  0x7c   : > { %2676 = vmatprep.subr.bf16.mxu1 %v2675_v50  ;;  %v2727_v50 = vpack.c.bf16 %v483_v41, %v482_v40  ;;  %v493_v39 = vld [vmem:[%s4576_s1 + $0x9f8] sm:$0xff]  ;;  %v2745_v41 = vpack.c.bf16 %v475_v35, %v474_v33  ;;  %v532_v33 = vld [vmem:[%s4576_s1 + $0xb30] sm:$0xff] }
  0x7d   : > { %v533_v35 = vld [vmem:[%s4576_s1 + $0xb38] sm:$0xff] }
  0x7e   : > { %2646 = vmatpush3.bf16.msra.mxu0 %v2645_v56  ;;  %v2697_v56 = vpack.c.bf16 %v435_v48, %v434_v47  ;;  %v477_v47 = vld [vmem:[%s4576_s1 + $0x978] sm:$0xff]  ;;  %v510_v48 = vld [vmem:[%s4576_s1 + $0xa80] sm:$0xff] }
  0x7f   : > { %2678 = vmatpush3.bf16.msra.mxu1 %v2677_v57  ;;  %2648 = vmatprep.subr.bf16.mxu0 %v2647_v58  ;;  %v2729_v57 = vpack.c.bf16 %v467_v51, %v466_v49  ;;  %v2699_v58 = vpack.c.bf16 %v453_v53, %v452_v52  ;;  %v511_v49 = vld [vmem:[%s4576_s1 + $0xa88] sm:$0xff] }
  0x80   : > { %2680 = vmatprep.subr.bf16.mxu1 %v2679_v62  ;;  %v2731_v62 = vpack.c.bf16 %v485_v55, %v484_v54  ;;  %v543_v51 = vld [vmem:[%s4576_s1 + $0xb88] sm:$0xff]  ;;  %v2751_v54 = vpack.c.bf16 %v511_v49, %v510_v48  ;;  %v494_v55 = vld [vmem:[%s4576_s1 + $0xa00] sm:$0xff]  ;;  %v520_v48 = vld [vmem:[%s4576_s1 + $0xad0] sm:$0xff] }
  0x81   : > { %v521_v49 = vld [vmem:[%s4576_s1 + $0xad8] sm:$0xff] }
  0x82   : > { %2650 = vmatpush3.bf16.msra.mxu0 %v2649_v4  ;;  %v2701_v4 = vpack.c.bf16 %v437_v60, %v436_v59  ;;  %v527_v59 = vld [vmem:[%s4576_s1 + $0xb08] sm:$0xff]  ;;  %v512_v60 = vld [vmem:[%s4576_s1 + $0xa90] sm:$0xff] }
  0x83   : > { %2682 = vmatpush3.bf16.msra.mxu1 %v2681_v5  ;;  %2652 = vmatprep.subr.bf16.mxu0 %v2651_v6  ;;  %v2733_v5 = vpack.c.bf16 %v469_v63, %v468_v61  ;;  %v2703_v6 = vpack.c.bf16 %v455_v1, %v454_v0  ;;  %v513_v61 = vld [vmem:[%s4576_s1 + $0xa98] sm:$0xff]  ;;  %v158_v0 = vld [vmem:[%s3148_s12 + $0x80] sm:$0xff] }
  0x84   : > { %2684 = vmatprep.subr.bf16.mxu1 %v2683_v10  ;;  %v2735_v10 = vpack.c.bf16 %v487_v3, %v486_v2  ;;  %v545_v63 = vld [vmem:[%s4576_s1 + $0xb98] sm:$0xff]  ;;  %v160_v2 = vld [vmem:[%s3148_s12 + $0x90] sm:$0xff] }
  0x86   : > { %2654 = vmatpush3.bf16.msra.mxu0 %v2653_v16  ;;  %v2705_v16 = vpack.c.bf16 %v439_v8, %v438_v7  ;;  %v528_v7 = vld [vmem:[%s4576_s1 + $0xb10] sm:$0xff] }
  0x87   : > { %2686 = vmatpush3.bf16.msra.mxu1 %v2685_v17  ;;  %2688 = vmatprep.subr.bf16.mxu0 %v2687_v18  ;;  %v2737_v17 = vpack.c.bf16 %v471_v11, %v470_v9  ;;  %v2707_v18 = vpack.c.bf16 %v457_v13, %v456_v12  ;;  %v529_v9 = vld [vmem:[%s4576_s1 + $0xb18] sm:$0xff]  ;;  %v515_v11 = vld [vmem:[%s4576_s1 + $0xaa8] sm:$0xff]  ;;  %v546_v12 = vld [vmem:[%s4576_s1 + $0xba0] sm:$0xff] }
  0x88   : > { %2720 = vmatprep.subr.bf16.mxu1 %v2719_v22  ;;  %v2739_v22 = vpack.c.bf16 %v489_v15, %v488_v14  ;;  %v547_v13 = vld [vmem:[%s4576_s1 + $0xba8] sm:$0xff] }
  0x89   : > { %1171 = vmatmul.mubr.f32.vlgmr.msra.gmra.mrb[6].mxu0 %v154_v28  ;;  %v2709_v28 = vpack.c.bf16 %v441_v20, %v440_v19  ;;  %v163_v14 = vld [vmem:[%s3148_s12 + $0xa8] sm:$0xff]  ;;  %v498_v19 = vld [vmem:[%s4576_s1 + $0xa20] sm:$0xff] }
  0x8a   : > { %2690 = vmatpush3.bf16.msra.mxu0 %v2689_v29  ;;  %1241 = vmatmul.mubr.f32.vlgmr.msra.gmra.mrb[6].mxu1 %v156_v30  ;;  %v2741_v29 = vpack.c.bf16 %v473_v23, %v472_v21  ;;  %v2711_v30 = vpack.c.bf16 %v459_v25, %v458_v24  ;;  %v499_v20 = vld [vmem:[%s4576_s1 + $0xa28] sm:$0xff]  ;;  %v530_v21 = vld [vmem:[%s4576_s1 + $0xb20] sm:$0xff]  ;;  %v516_v24 = vld [vmem:[%s4576_s1 + $0xab0] sm:$0xff] }
  0x8b   : > { %2722 = vmatpush3.bf16.msra.mxu1 %v2721_v31  ;;  %2692 = vmatprep.subr.bf16.mxu0 %v2691_v32  ;;  %v442_v31 = vld [vmem:[%s4576_s1 + $0x860] sm:$0xff]  ;;  %v443_v32 = vld [vmem:[%s4576_s1 + $0x868] sm:$0xff]  ;;  %v517_v25 = vld [vmem:[%s4576_s1 + $0xab8] sm:$0xff] }
  0x8c   : > { %2724 = vmatprep.subr.bf16.mxu1 %v2723_v36  ;;  %1310 = vmatprep.mubr.f32.mxu0 %v159_v42  ;;  %v460_v36 = vld [vmem:[%s4576_s1 + $0x8f0] sm:$0xff]  ;;  %v2713_v40 = vpack.c.bf16 %v443_v32, %v442_v31  ;;  %v531_v23 = vld [vmem:[%s4576_s1 + $0xb28] sm:$0xff]  ;;  %v501_v32 = vld [vmem:[%s4576_s1 + $0xa38] sm:$0xff] }
  0x8d   : > { %1380 = vmatprep.mubr.f32.mxu1 %v161_v44  ;;  %v2715_v42 = vpack.c.bf16 %v461_v37, %v460_v36  ;;  %v445_v44 = vld [vmem:[%s4576_s1 + $0x878] sm:$0xff]  ;;  %v500_v31 = vld [vmem:[%s4576_s1 + $0xa30] sm:$0xff]  ;;  %v518_v36 = vld [vmem:[%s4576_s1 + $0xac0] sm:$0xff] }
  0x8e   : > { %2694 = vmatpush3.bf16.msra.mxu0 %v2693_v43  ;;  %v444_v43 = vld [vmem:[%s4576_s1 + $0x870] sm:$0xff]  ;;  %v519_v37 = vld [vmem:[%s4576_s1 + $0xac8] sm:$0xff] }
  0x8f   : > { %2726 = vmatpush3.bf16.msra.mxu1 %v2725_v45  ;;  %2696 = vmatprep.subr.bf16.mxu0 %v2695_v46  ;;  %v476_v45 = vld [vmem:[%s4576_s1 + $0x970] sm:$0xff]  ;;  %v2747_v46 = vpack.c.bf16 %v493_v39, %v492_v38  ;;  %v2717_v52 = vpack.c.bf16 %v445_v44, %v444_v43  ;;  %v550_v38 = vld [vmem:[%s4576_s1 + $0xbc0] sm:$0xff]  ;;  %v551_v39 = vld [vmem:[%s4576_s1 + $0xbc8] sm:$0xff] }
  0x90   : > { %2728 = vmatprep.subr.bf16.mxu1 %v2727_v50  ;;  %v542_v50 = vld [vmem:[%s4576_s1 + $0xb80] sm:$0xff]  ;;  %v2749_v53 = vpack.c.bf16 %v477_v47, %v476_v45  ;;  %v503_v44 = vld [vmem:[%s4576_s1 + $0xa48] sm:$0xff] }
  0x91   : > { %v502_v43 = vld [vmem:[%s4576_s1 + $0xa40] sm:$0xff]  ;;  %v535_v47 = vld [vmem:[%s4576_s1 + $0xb48] sm:$0xff] }
  0x92   : > { %2698 = vmatpush3.bf16.msra.mxu0 %v2697_v56  ;;  %v495_v56 = vld [vmem:[%s4576_s1 + $0xa08] sm:$0xff]  ;;  %v534_v45 = vld [vmem:[%s4576_s1 + $0xb40] sm:$0xff] }
  0x93   : > { %2730 = vmatpush3.bf16.msra.mxu1 %v2729_v57  ;;  %2700 = vmatprep.subr.bf16.mxu0 %v2699_v58  ;;  %v526_v57 = vld [vmem:[%s4576_s1 + $0xb00] sm:$0xff]  ;;  %v2783_v58 = vpack.c.bf16 %v543_v51, %v542_v50  ;;  %v2753_v1 = vpack.c.bf16 %v495_v56, %v494_v55  ;;  %v552_v50 = vld [vmem:[%s4576_s1 + $0xbd0] sm:$0xff]  ;;  %v553_v51 = vld [vmem:[%s4576_s1 + $0xbd8] sm:$0xff] }
  0x94   : > { %2732 = vmatprep.subr.bf16.mxu1 %v2731_v62  ;;  %v544_v62 = vld [vmem:[%s4576_s1 + $0xb90] sm:$0xff]  ;;  %v2785_v3 = vpack.c.bf16 %v527_v59, %v526_v57  ;;  %v505_v56 = vld [vmem:[%s4576_s1 + $0xa58] sm:$0xff] }
  0x95   : > { %v2787_v8 = vpack.c.bf16 %v545_v63, %v544_v62  ;;  %v504_v55 = vld [vmem:[%s4576_s1 + $0xa50] sm:$0xff]  ;;  %v537_v59 = vld [vmem:[%s4576_s1 + $0xb58] sm:$0xff]  ;;  %v554_v62 = vld [vmem:[%s4576_s1 + $0xbe0] sm:$0xff] }
  0x96   : > { %2702 = vmatpush3.bf16.msra.mxu0 %v2701_v4  ;;  %v2755_v4 = vpack.c.bf16 %v513_v61, %v512_v60  ;;  %v536_v57 = vld [vmem:[%s4576_s1 + $0xb50] sm:$0xff]  ;;  %v522_v60 = vld [vmem:[%s4576_s1 + $0xae0] sm:$0xff]  ;;  %v523_v61 = vld [vmem:[%s4576_s1 + $0xae8] sm:$0xff] }
  0x97   : > { %2734 = vmatpush3.bf16.msra.mxu1 %v2733_v5  ;;  %2704 = vmatprep.subr.bf16.mxu0 %v2703_v6  ;;  %v496_v5 = vld [vmem:[%s4576_s1 + $0xa10] sm:$0xff]  ;;  %v497_v6 = vld [vmem:[%s4576_s1 + $0xa18] sm:$0xff]  ;;  %v555_v63 = vld [vmem:[%s4576_s1 + $0xbe8] sm:$0xff] }
  0x98   : > { %2736 = vmatprep.subr.bf16.mxu1 %v2735_v10  ;;  %v514_v10 = vld [vmem:[%s4576_s1 + $0xaa0] sm:$0xff]  ;;  %v2757_v15 = vpack.c.bf16 %v497_v6, %v496_v5  ;;  %v2807_v6 = vpack.c.bf16 %v555_v63, %v554_v62  ;;  %v612_v62 = vld [vmem:[%s4576_s1 + $0xdb0] sm:$0xff]  ;;  %v613_v63 = vld [vmem:[%s4576_s1 + $0xdb8] sm:$0xff] }
  0x99   : > { %v538_v5 = vld [vmem:[%s4576_s1 + $0xb60] sm:$0xff] }
  0x9a   : > { %2706 = vmatpush3.bf16.msra.mxu0 %v2705_v16  ;;  %v165_v16 = vld [vmem:[%s3148_s12 + $0xb8] sm:$0xff] }
  0x9b   : > { %2738 = vmatpush3.bf16.msra.mxu1 %v2737_v17  ;;  %2708 = vmatprep.subr.bf16.mxu0 %v2707_v18  ;;  %v2789_v17 = vpack.c.bf16 %v529_v9, %v528_v7  ;;  %v2759_v18 = vpack.c.bf16 %v515_v11, %v514_v10  ;;  %v539_v7 = vld [vmem:[%s4576_s1 + $0xb68] sm:$0xff]  ;;  %v525_v9 = vld [vmem:[%s4576_s1 + $0xaf8] sm:$0xff]  ;;  %v556_v10 = vld [vmem:[%s4576_s1 + $0xbf0] sm:$0xff] }
  0x9c   : > { %2740 = vmatprep.subr.bf16.mxu1 %v2739_v22  ;;  %v2791_v22 = vpack.c.bf16 %v547_v13, %v546_v12  ;;  %v557_v11 = vld [vmem:[%s4576_s1 + $0xbf8] sm:$0xff]  ;;  %v2809_v13 = vpack.c.bf16 %v539_v7, %v538_v5  ;;  %v596_v5 = vld [vmem:[%s4576_s1 + $0xd30] sm:$0xff] }
  0x9d   : > { %v597_v7 = vld [vmem:[%s4576_s1 + $0xd38] sm:$0xff] }
  0x9e   : > { %2710 = vmatpush3.bf16.msra.mxu0 %v2709_v28  ;;  %v2761_v28 = vpack.c.bf16 %v499_v20, %v498_v19  ;;  %v541_v19 = vld [vmem:[%s4576_s1 + $0xb78] sm:$0xff]  ;;  %v574_v20 = vld [vmem:[%s4576_s1 + $0xc80] sm:$0xff] }
  0x9f   : > { %2742 = vmatpush3.bf16.msra.mxu1 %v2741_v29  ;;  %2712 = vmatprep.subr.bf16.mxu0 %v2711_v30  ;;  %v2793_v29 = vpack.c.bf16 %v531_v23, %v530_v21  ;;  %v2763_v30 = vpack.c.bf16 %v517_v25, %v516_v24  ;;  %v575_v21 = vld [vmem:[%s4576_s1 + $0xc88] sm:$0xff] }
  0xa0   : > { %2744 = vmatprep.subr.bf16.mxu1 %v2743_v34  ;;  %v2795_v34 = vpack.c.bf16 %v549_v27, %v548_v26  ;;  %v607_v23 = vld [vmem:[%s4576_s1 + $0xd88] sm:$0xff]  ;;  %v2815_v26 = vpack.c.bf16 %v575_v21, %v574_v20  ;;  %v558_v27 = vld [vmem:[%s4576_s1 + $0xc00] sm:$0xff]  ;;  %v584_v20 = vld [vmem:[%s4576_s1 + $0xcd0] sm:$0xff] }
  0xa1   : > { %v585_v21 = vld [vmem:[%s4576_s1 + $0xcd8] sm:$0xff] }
  0xa2   : > { %2714 = vmatpush3.bf16.msra.mxu0 %v2713_v40  ;;  %v2765_v40 = vpack.c.bf16 %v501_v32, %v500_v31  ;;  %v591_v31 = vld [vmem:[%s4576_s1 + $0xd08] sm:$0xff]  ;;  %v576_v32 = vld [vmem:[%s4576_s1 + $0xc90] sm:$0xff] }
  0xa3   : > { %2746 = vmatpush3.bf16.msra.mxu1 %v2745_v41  ;;  %2716 = vmatprep.subr.bf16.mxu0 %v2715_v42  ;;  %v2797_v41 = vpack.c.bf16 %v533_v35, %v532_v33  ;;  %v2767_v42 = vpack.c.bf16 %v519_v37, %v518_v36  ;;  %v577_v33 = vld [vmem:[%s4576_s1 + $0xc98] sm:$0xff]  ;;  %v162_v36 = vld [vmem:[%s3148_s12 + $0xa0] sm:$0xff] }
  0xa4   : > { %2748 = vmatprep.subr.bf16.mxu1 %v2747_v46  ;;  %v2799_v46 = vpack.c.bf16 %v551_v39, %v550_v38  ;;  %v609_v35 = vld [vmem:[%s4576_s1 + $0xd98] sm:$0xff]  ;;  %v164_v38 = vld [vmem:[%s3148_s12 + $0xb0] sm:$0xff] }
  0xa6   : > { %2718 = vmatpush3.bf16.msra.mxu0 %v2717_v52  ;;  %v2769_v52 = vpack.c.bf16 %v503_v44, %v502_v43  ;;  %v592_v43 = vld [vmem:[%s4576_s1 + $0xd10] sm:$0xff] }
  0xa7   : > { %2750 = vmatpush3.bf16.msra.mxu1 %v2749_v53  ;;  %2752 = vmatprep.subr.bf16.mxu0 %v2751_v54  ;;  %v2801_v53 = vpack.c.bf16 %v535_v47, %v534_v45  ;;  %v2771_v54 = vpack.c.bf16 %v521_v49, %v520_v48  ;;  %v593_v45 = vld [vmem:[%s4576_s1 + $0xd18] sm:$0xff]  ;;  %v579_v47 = vld [vmem:[%s4576_s1 + $0xca8] sm:$0xff]  ;;  %v610_v48 = vld [vmem:[%s4576_s1 + $0xda0] sm:$0xff] }
  0xa8   : > { %2784 = vmatprep.subr.bf16.mxu1 %v2783_v58  ;;  %v2803_v58 = vpack.c.bf16 %v553_v51, %v552_v50  ;;  %v611_v49 = vld [vmem:[%s4576_s1 + $0xda8] sm:$0xff] }
  0xa9   : > { %1311 = vmatmul.mubr.f32.vlgmr.msra.gmra.mrb[8].mxu0 %v158_v0  ;;  %v2773_v0 = vpack.c.bf16 %v505_v56, %v504_v55  ;;  %v167_v50 = vld [vmem:[%s3148_s12 + $0xc8] sm:$0xff]  ;;  %v562_v55 = vld [vmem:[%s4576_s1 + $0xc20] sm:$0xff] }
  0xaa   : > { %2754 = vmatpush3.bf16.msra.mxu0 %v2753_v1  ;;  %1381 = vmatmul.mubr.f32.vlgmr.msra.gmra.mrb[8].mxu1 %v160_v2  ;;  %v2805_v1 = vpack.c.bf16 %v537_v59, %v536_v57  ;;  %v2775_v2 = vpack.c.bf16 %v523_v61, %v522_v60  ;;  %v563_v56 = vld [vmem:[%s4576_s1 + $0xc28] sm:$0xff]  ;;  %v594_v57 = vld [vmem:[%s4576_s1 + $0xd20] sm:$0xff]  ;;  %v580_v60 = vld [vmem:[%s4576_s1 + $0xcb0] sm:$0xff] }
  0xab   : > { %2786 = vmatpush3.bf16.msra.mxu1 %v2785_v3  ;;  %2756 = vmatprep.subr.bf16.mxu0 %v2755_v4  ;;  %v506_v3 = vld [vmem:[%s4576_s1 + $0xa60] sm:$0xff]  ;;  %v507_v4 = vld [vmem:[%s4576_s1 + $0xa68] sm:$0xff]  ;;  %v581_v61 = vld [vmem:[%s4576_s1 + $0xcb8] sm:$0xff] }
  0xac   : > { %2788 = vmatprep.subr.bf16.mxu1 %v2787_v8  ;;  %1450 = vmatprep.mubr.f32.mxu0 %v163_v14  ;;  %v524_v8 = vld [vmem:[%s4576_s1 + $0xaf0] sm:$0xff]  ;;  %v2777_v12 = vpack.c.bf16 %v507_v4, %v506_v3  ;;  %v595_v59 = vld [vmem:[%s4576_s1 + $0xd28] sm:$0xff]  ;;  %v565_v4 = vld [vmem:[%s4576_s1 + $0xc38] sm:$0xff] }
  0xad   : > { %1520 = vmatprep.mubr.f32.mxu1 %v165_v16  ;;  %v2779_v14 = vpack.c.bf16 %v525_v9, %v524_v8  ;;  %v509_v16 = vld [vmem:[%s4576_s1 + $0xa78] sm:$0xff]  ;;  %v564_v3 = vld [vmem:[%s4576_s1 + $0xc30] sm:$0xff]  ;;  %v582_v8 = vld [vmem:[%s4576_s1 + $0xcc0] sm:$0xff] }
  0xae   : > { %2758 = vmatpush3.bf16.msra.mxu0 %v2757_v15  ;;  %v508_v15 = vld [vmem:[%s4576_s1 + $0xa70] sm:$0xff]  ;;  %v583_v9 = vld [vmem:[%s4576_s1 + $0xcc8] sm:$0xff] }
  0xaf   : > { %2790 = vmatpush3.bf16.msra.mxu1 %v2789_v17  ;;  %2760 = vmatprep.subr.bf16.mxu0 %v2759_v18  ;;  %v540_v17 = vld [vmem:[%s4576_s1 + $0xb70] sm:$0xff]  ;;  %v2811_v18 = vpack.c.bf16 %v557_v11, %v556_v10  ;;  %v2781_v24 = vpack.c.bf16 %v509_v16, %v508_v15  ;;  %v614_v10 = vld [vmem:[%s4576_s1 + $0xdc0] sm:$0xff]  ;;  %v615_v11 = vld [vmem:[%s4576_s1 + $0xdc8] sm:$0xff] }
  0xb0   : > { %2792 = vmatprep.subr.bf16.mxu1 %v2791_v22  ;;  %v606_v22 = vld [vmem:[%s4576_s1 + $0xd80] sm:$0xff]  ;;  %v2813_v25 = vpack.c.bf16 %v541_v19, %v540_v17  ;;  %v567_v16 = vld [vmem:[%s4576_s1 + $0xc48] sm:$0xff] }
  0xb1   : > { %v566_v15 = vld [vmem:[%s4576_s1 + $0xc40] sm:$0xff]  ;;  %v599_v19 = vld [vmem:[%s4576_s1 + $0xd48] sm:$0xff] }
  0xb2   : > { %2762 = vmatpush3.bf16.msra.mxu0 %v2761_v28  ;;  %v559_v28 = vld [vmem:[%s4576_s1 + $0xc08] sm:$0xff]  ;;  %v598_v17 = vld [vmem:[%s4576_s1 + $0xd40] sm:$0xff] }
  0xb3   : > { %2794 = vmatpush3.bf16.msra.mxu1 %v2793_v29  ;;  %2764 = vmatprep.subr.bf16.mxu0 %v2763_v30  ;;  %v590_v29 = vld [vmem:[%s4576_s1 + $0xd00] sm:$0xff]  ;;  %v2847_v30 = vpack.c.bf16 %v607_v23, %v606_v22  ;;  %v2817_v37 = vpack.c.bf16 %v559_v28, %v558_v27  ;;  %v616_v22 = vld [vmem:[%s4576_s1 + $0xdd0] sm:$0xff]  ;;  %v617_v23 = vld [vmem:[%s4576_s1 + $0xdd8] sm:$0xff] }
  0xb4   : > { %2796 = vmatprep.subr.bf16.mxu1 %v2795_v34  ;;  %v608_v34 = vld [vmem:[%s4576_s1 + $0xd90] sm:$0xff]  ;;  %v2849_v39 = vpack.c.bf16 %v591_v31, %v590_v29  ;;  %v569_v28 = vld [vmem:[%s4576_s1 + $0xc58] sm:$0xff] }
  0xb5   : > { %v2851_v44 = vpack.c.bf16 %v609_v35, %v608_v34  ;;  %v568_v27 = vld [vmem:[%s4576_s1 + $0xc50] sm:$0xff]  ;;  %v601_v31 = vld [vmem:[%s4576_s1 + $0xd58] sm:$0xff]  ;;  %v618_v34 = vld [vmem:[%s4576_s1 + $0xde0] sm:$0xff] }
  0xb6   : > { %2766 = vmatpush3.bf16.msra.mxu0 %v2765_v40  ;;  %v2819_v40 = vpack.c.bf16 %v577_v33, %v576_v32  ;;  %v600_v29 = vld [vmem:[%s4576_s1 + $0xd50] sm:$0xff]  ;;  %v586_v32 = vld [vmem:[%s4576_s1 + $0xce0] sm:$0xff]  ;;  %v587_v33 = vld [vmem:[%s4576_s1 + $0xce8] sm:$0xff] }
  0xb7   : > { %2798 = vmatpush3.bf16.msra.mxu1 %v2797_v41  ;;  %2768 = vmatprep.subr.bf16.mxu0 %v2767_v42  ;;  %v560_v41 = vld [vmem:[%s4576_s1 + $0xc10] sm:$0xff]  ;;  %v561_v42 = vld [vmem:[%s4576_s1 + $0xc18] sm:$0xff]  ;;  %v619_v35 = vld [vmem:[%s4576_s1 + $0xde8] sm:$0xff] }
  0xb8   : > { %2800 = vmatprep.subr.bf16.mxu1 %v2799_v46  ;;  %v578_v46 = vld [vmem:[%s4576_s1 + $0xca0] sm:$0xff]  ;;  %v2821_v51 = vpack.c.bf16 %v561_v42, %v560_v41  ;;  %v2871_v42 = vpack.c.bf16 %v619_v35, %v618_v34  ;;  %v676_v34 = vld [vmem:[%s4576_s1 + $0xfb0] sm:$0xff]  ;;  %v677_v35 = vld [vmem:[%s4576_s1 + $0xfb8] sm:$0xff] }
  0xb9   : > { %v602_v41 = vld [vmem:[%s4576_s1 + $0xd60] sm:$0xff] }
  0xba   : > { %2770 = vmatpush3.bf16.msra.mxu0 %v2769_v52  ;;  %v169_v52 = vld [vmem:[%s3148_s12 + $0xd8] sm:$0xff] }
  0xbb   : > { %2802 = vmatpush3.bf16.msra.mxu1 %v2801_v53  ;;  %2772 = vmatprep.subr.bf16.mxu0 %v2771_v54  ;;  %v2853_v53 = vpack.c.bf16 %v593_v45, %v592_v43  ;;  %v2823_v54 = vpack.c.bf16 %v579_v47, %v578_v46  ;;  %v603_v43 = vld [vmem:[%s4576_s1 + $0xd68] sm:$0xff]  ;;  %v589_v45 = vld [vmem:[%s4576_s1 + $0xcf8] sm:$0xff]  ;;  %v620_v46 = vld [vmem:[%s4576_s1 + $0xdf0] sm:$0xff] }
  0xbc   : > { %2804 = vmatprep.subr.bf16.mxu1 %v2803_v58  ;;  %v2855_v58 = vpack.c.bf16 %v611_v49, %v610_v48  ;;  %v621_v47 = vld [vmem:[%s4576_s1 + $0xdf8] sm:$0xff]  ;;  %v2873_v49 = vpack.c.bf16 %v603_v43, %v602_v41  ;;  %v660_v41 = vld [vmem:[%s4576_s1 + $0xf30] sm:$0xff] }
  0xbd   : > { %v661_v43 = vld [vmem:[%s4576_s1 + $0xf38] sm:$0xff] }
  0xbe   : > { %2774 = vmatpush3.bf16.msra.mxu0 %v2773_v0  ;;  %v2825_v0 = vpack.c.bf16 %v563_v56, %v562_v55  ;;  %v605_v55 = vld [vmem:[%s4576_s1 + $0xd78] sm:$0xff]  ;;  %v638_v56 = vld [vmem:[%s4576_s1 + $0xe80] sm:$0xff] }
  0xbf   : > { %2806 = vmatpush3.bf16.msra.mxu1 %v2805_v1  ;;  %2776 = vmatprep.subr.bf16.mxu0 %v2775_v2  ;;  %v2857_v1 = vpack.c.bf16 %v595_v59, %v594_v57  ;;  %v2827_v2 = vpack.c.bf16 %v581_v61, %v580_v60  ;;  %v639_v57 = vld [vmem:[%s4576_s1 + $0xe88] sm:$0xff] }
  0xc0   : > { %2808 = vmatprep.subr.bf16.mxu1 %v2807_v6  ;;  %v2859_v6 = vpack.c.bf16 %v613_v63, %v612_v62  ;;  %v671_v59 = vld [vmem:[%s4576_s1 + $0xf88] sm:$0xff]  ;;  %v2879_v62 = vpack.c.bf16 %v639_v57, %v638_v56  ;;  %v622_v63 = vld [vmem:[%s4576_s1 + $0xe00] sm:$0xff]  ;;  %v648_v56 = vld [vmem:[%s4576_s1 + $0xed0] sm:$0xff] }
  0xc1   : > { %v649_v57 = vld [vmem:[%s4576_s1 + $0xed8] sm:$0xff] }
  0xc2   : > { %2778 = vmatpush3.bf16.msra.mxu0 %v2777_v12  ;;  %v2829_v12 = vpack.c.bf16 %v565_v4, %v564_v3  ;;  %v655_v3 = vld [vmem:[%s4576_s1 + $0xf08] sm:$0xff]  ;;  %v640_v4 = vld [vmem:[%s4576_s1 + $0xe90] sm:$0xff] }
  0xc3   : > { %2810 = vmatpush3.bf16.msra.mxu1 %v2809_v13  ;;  %2780 = vmatprep.subr.bf16.mxu0 %v2779_v14  ;;  %v2861_v13 = vpack.c.bf16 %v597_v7, %v596_v5  ;;  %v2831_v14 = vpack.c.bf16 %v583_v9, %v582_v8  ;;  %v641_v5 = vld [vmem:[%s4576_s1 + $0xe98] sm:$0xff]  ;;  %v166_v8 = vld [vmem:[%s3148_s12 + $0xc0] sm:$0xff] }
  0xc4   : > { %2812 = vmatprep.subr.bf16.mxu1 %v2811_v18  ;;  %v2863_v18 = vpack.c.bf16 %v615_v11, %v614_v10  ;;  %v673_v7 = vld [vmem:[%s4576_s1 + $0xf98] sm:$0xff]  ;;  %v168_v10 = vld [vmem:[%s3148_s12 + $0xd0] sm:$0xff] }
  0xc6   : > { %2782 = vmatpush3.bf16.msra.mxu0 %v2781_v24  ;;  %v2833_v24 = vpack.c.bf16 %v567_v16, %v566_v15  ;;  %v656_v15 = vld [vmem:[%s4576_s1 + $0xf10] sm:$0xff] }
  0xc7   : > { %2814 = vmatpush3.bf16.msra.mxu1 %v2813_v25  ;;  %2816 = vmatprep.subr.bf16.mxu0 %v2815_v26  ;;  %v2865_v25 = vpack.c.bf16 %v599_v19, %v598_v17  ;;  %v2835_v26 = vpack.c.bf16 %v585_v21, %v584_v20  ;;  %v657_v17 = vld [vmem:[%s4576_s1 + $0xf18] sm:$0xff]  ;;  %v643_v19 = vld [vmem:[%s4576_s1 + $0xea8] sm:$0xff]  ;;  %v674_v20 = vld [vmem:[%s4576_s1 + $0xfa0] sm:$0xff] }
  0xc8   : > { %2848 = vmatprep.subr.bf16.mxu1 %v2847_v30  ;;  %v2867_v30 = vpack.c.bf16 %v617_v23, %v616_v22  ;;  %v675_v21 = vld [vmem:[%s4576_s1 + $0xfa8] sm:$0xff] }
  0xc9   : > { %1451 = vmatmul.mubr.f32.vlgmr.msra.gmra.mrb[10].mxu0 %v162_v36  ;;  %v2837_v36 = vpack.c.bf16 %v569_v28, %v568_v27  ;;  %v171_v22 = vld [vmem:[%s3148_s12 + $0xe8] sm:$0xff]  ;;  %v626_v27 = vld [vmem:[%s4576_s1 + $0xe20] sm:$0xff] }
  0xca   : > { %2818 = vmatpush3.bf16.msra.mxu0 %v2817_v37  ;;  %1521 = vmatmul.mubr.f32.vlgmr.msra.gmra.mrb[10].mxu1 %v164_v38  ;;  %v2869_v37 = vpack.c.bf16 %v601_v31, %v600_v29  ;;  %v2839_v38 = vpack.c.bf16 %v587_v33, %v586_v32  ;;  %v627_v28 = vld [vmem:[%s4576_s1 + $0xe28] sm:$0xff]  ;;  %v658_v29 = vld [vmem:[%s4576_s1 + $0xf20] sm:$0xff]  ;;  %v644_v32 = vld [vmem:[%s4576_s1 + $0xeb0] sm:$0xff] }
  0xcb   : > { %2850 = vmatpush3.bf16.msra.mxu1 %v2849_v39  ;;  %2820 = vmatprep.subr.bf16.mxu0 %v2819_v40  ;;  %v570_v39 = vld [vmem:[%s4576_s1 + $0xc60] sm:$0xff]  ;;  %v571_v40 = vld [vmem:[%s4576_s1 + $0xc68] sm:$0xff]  ;;  %v645_v33 = vld [vmem:[%s4576_s1 + $0xeb8] sm:$0xff] }
  0xcc   : > { %2852 = vmatprep.subr.bf16.mxu1 %v2851_v44  ;;  %1590 = vmatprep.mubr.f32.mxu0 %v167_v50  ;;  %v588_v44 = vld [vmem:[%s4576_s1 + $0xcf0] sm:$0xff]  ;;  %v2841_v48 = vpack.c.bf16 %v571_v40, %v570_v39  ;;  %v659_v31 = vld [vmem:[%s4576_s1 + $0xf28] sm:$0xff]  ;;  %v629_v40 = vld [vmem:[%s4576_s1 + $0xe38] sm:$0xff] }
  0xcd   : > { %1660 = vmatprep.mubr.f32.mxu1 %v169_v52  ;;  %v2843_v50 = vpack.c.bf16 %v589_v45, %v588_v44  ;;  %v573_v52 = vld [vmem:[%s4576_s1 + $0xc78] sm:$0xff]  ;;  %v628_v39 = vld [vmem:[%s4576_s1 + $0xe30] sm:$0xff]  ;;  %v646_v44 = vld [vmem:[%s4576_s1 + $0xec0] sm:$0xff] }
  0xce   : > { %2822 = vmatpush3.bf16.msra.mxu0 %v2821_v51  ;;  %v572_v51 = vld [vmem:[%s4576_s1 + $0xc70] sm:$0xff]  ;;  %v647_v45 = vld [vmem:[%s4576_s1 + $0xec8] sm:$0xff] }
  0xcf   : > { %2854 = vmatpush3.bf16.msra.mxu1 %v2853_v53  ;;  %2824 = vmatprep.subr.bf16.mxu0 %v2823_v54  ;;  %v604_v53 = vld [vmem:[%s4576_s1 + $0xd70] sm:$0xff]  ;;  %v2875_v54 = vpack.c.bf16 %v621_v47, %v620_v46  ;;  %v2845_v60 = vpack.c.bf16 %v573_v52, %v572_v51  ;;  %v678_v46 = vld [vmem:[%s4576_s1 + $0xfc0] sm:$0xff]  ;;  %v679_v47 = vld [vmem:[%s4576_s1 + $0xfc8] sm:$0xff] }
  0xd0   : > { %2856 = vmatprep.subr.bf16.mxu1 %v2855_v58  ;;  %v670_v58 = vld [vmem:[%s4576_s1 + $0xf80] sm:$0xff]  ;;  %v2877_v61 = vpack.c.bf16 %v605_v55, %v604_v53  ;;  %v631_v52 = vld [vmem:[%s4576_s1 + $0xe48] sm:$0xff] }
  0xd1   : > { %v630_v51 = vld [vmem:[%s4576_s1 + $0xe40] sm:$0xff]  ;;  %v663_v55 = vld [vmem:[%s4576_s1 + $0xf48] sm:$0xff] }
  0xd2   : > { %2826 = vmatpush3.bf16.msra.mxu0 %v2825_v0  ;;  %v623_v0 = vld [vmem:[%s4576_s1 + $0xe08] sm:$0xff]  ;;  %v662_v53 = vld [vmem:[%s4576_s1 + $0xf40] sm:$0xff] }
  0xd3   : > { %2858 = vmatpush3.bf16.msra.mxu1 %v2857_v1  ;;  %2828 = vmatprep.subr.bf16.mxu0 %v2827_v2  ;;  %v654_v1 = vld [vmem:[%s4576_s1 + $0xf00] sm:$0xff]  ;;  %v2911_v2 = vpack.c.bf16 %v671_v59, %v670_v58  ;;  %v2881_v9 = vpack.c.bf16 %v623_v0, %v622_v63  ;;  %v680_v58 = vld [vmem:[%s4576_s1 + $0xfd0] sm:$0xff]  ;;  %v681_v59 = vld [vmem:[%s4576_s1 + $0xfd8] sm:$0xff] }
  0xd4   : > { %2860 = vmatprep.subr.bf16.mxu1 %v2859_v6  ;;  %v672_v6 = vld [vmem:[%s4576_s1 + $0xf90] sm:$0xff]  ;;  %v2913_v11 = vpack.c.bf16 %v655_v3, %v654_v1  ;;  %v633_v0 = vld [vmem:[%s4576_s1 + $0xe58] sm:$0xff] }
  0xd5   : > { %v2915_v16 = vpack.c.bf16 %v673_v7, %v672_v6  ;;  %v632_v63 = vld [vmem:[%s4576_s1 + $0xe50] sm:$0xff]  ;;  %v665_v3 = vld [vmem:[%s4576_s1 + $0xf58] sm:$0xff]  ;;  %v682_v6 = vld [vmem:[%s4576_s1 + $0xfe0] sm:$0xff] }
  0xd6   : > { %2830 = vmatpush3.bf16.msra.mxu0 %v2829_v12  ;;  %v2883_v12 = vpack.c.bf16 %v641_v5, %v640_v4  ;;  %v664_v1 = vld [vmem:[%s4576_s1 + $0xf50] sm:$0xff]  ;;  %v650_v4 = vld [vmem:[%s4576_s1 + $0xee0] sm:$0xff]  ;;  %v651_v5 = vld [vmem:[%s4576_s1 + $0xee8] sm:$0xff] }
  0xd7   : > { %2862 = vmatpush3.bf16.msra.mxu1 %v2861_v13  ;;  %2832 = vmatprep.subr.bf16.mxu0 %v2831_v14  ;;  %v624_v13 = vld [vmem:[%s4576_s1 + $0xe10] sm:$0xff]  ;;  %v625_v14 = vld [vmem:[%s4576_s1 + $0xe18] sm:$0xff]  ;;  %v683_v7 = vld [vmem:[%s4576_s1 + $0xfe8] sm:$0xff] }
  0xd8   : > { %2864 = vmatprep.subr.bf16.mxu1 %v2863_v18  ;;  %v642_v18 = vld [vmem:[%s4576_s1 + $0xea0] sm:$0xff]  ;;  %v2885_v23 = vpack.c.bf16 %v625_v14, %v624_v13 }
  0xd9   : > { %v666_v13 = vld [vmem:[%s4576_s1 + $0xf60] sm:$0xff] }
  0xda   : > { %2834 = vmatpush3.bf16.msra.mxu0 %v2833_v24  ;;  %v173_v24 = vld [vmem:[%s3148_s12 + $0xf8] sm:$0xff] }
  0xdb   : > { %2866 = vmatpush3.bf16.msra.mxu1 %v2865_v25  ;;  %2836 = vmatprep.subr.bf16.mxu0 %v2835_v26  ;;  %v2917_v25 = vpack.c.bf16 %v657_v17, %v656_v15  ;;  %v2887_v26 = vpack.c.bf16 %v643_v19, %v642_v18  ;;  %v2935_v15 = vpack.c.bf16 %v683_v7, %v682_v6  ;;  %v652_v17 = vld [vmem:[%s4576_s1 + $0xef0] sm:$0xff]  ;;  %v653_v18 = vld [vmem:[%s4576_s1 + $0xef8] sm:$0xff] }
  0xdc   : > { %2868 = vmatprep.subr.bf16.mxu1 %v2867_v30  ;;  %v2919_v30 = vpack.c.bf16 %v675_v21, %v674_v20  ;;  %v684_v21 = vld [vmem:[%s4576_s1 + $0xff0] sm:$0xff] }
  0xde   : > { %2838 = vmatpush3.bf16.msra.mxu0 %v2837_v36  ;;  %v2889_v36 = vpack.c.bf16 %v627_v28, %v626_v27  ;;  %v2907_v28 = vpack.c.bf16 %v653_v18, %v652_v17 }
  0xdf   : > { %2870 = vmatpush3.bf16.msra.mxu1 %v2869_v37  ;;  %2840 = vmatprep.subr.bf16.mxu0 %v2839_v38  ;;  %v2921_v37 = vpack.c.bf16 %v659_v31, %v658_v29  ;;  %v2891_v38 = vpack.c.bf16 %v645_v33, %v644_v32  ;;  %v636_v29 = vld [vmem:[%s4576_s1 + $0xe70] sm:$0xff]  ;;  %v669_v33 = vld [vmem:[%s4576_s1 + $0xf78] sm:$0xff] }
  0xe0   : > { %2872 = vmatprep.subr.bf16.mxu1 %v2871_v42  ;;  %v2923_v42 = vpack.c.bf16 %v677_v35, %v676_v34  ;;  %v668_v32 = vld [vmem:[%s4576_s1 + $0xf70] sm:$0xff] }
  0xe2   : > { %2842 = vmatpush3.bf16.msra.mxu0 %v2841_v48  ;;  %v2893_v48 = vpack.c.bf16 %v629_v40, %v628_v39 }
  0xe3   : > { %2874 = vmatpush3.bf16.msra.mxu1 %v2873_v49  ;;  %2844 = vmatprep.subr.bf16.mxu0 %v2843_v50  ;;  %v2925_v49 = vpack.c.bf16 %v661_v43, %v660_v41  ;;  %v2895_v50 = vpack.c.bf16 %v647_v45, %v646_v44 }
  0xe4   : > { %2876 = vmatprep.subr.bf16.mxu1 %v2875_v54  ;;  %v2927_v54 = vpack.c.bf16 %v679_v47, %v678_v46 }
  0xe6   : > { %2846 = vmatpush3.bf16.msra.mxu0 %v2845_v60  ;;  %v2897_v60 = vpack.c.bf16 %v631_v52, %v630_v51 }
  0xe7   : > { %2878 = vmatpush3.bf16.msra.mxu1 %v2877_v61  ;;  %2880 = vmatprep.subr.bf16.mxu0 %v2879_v62  ;;  %v2929_v61 = vpack.c.bf16 %v663_v55, %v662_v53  ;;  %v2899_v62 = vpack.c.bf16 %v649_v57, %v648_v56 }
  0xe8   : > { %2912 = vmatprep.subr.bf16.mxu1 %v2911_v2  ;;  %v2931_v2 = vpack.c.bf16 %v681_v59, %v680_v58 }
  0xe9   : > { %1591 = vmatmul.mubr.f32.vlgmr.msra.gmra.mrb[12].mxu0 %v166_v8  ;;  %v2901_v8 = vpack.c.bf16 %v633_v0, %v632_v63 }
  0xea   : > { %2882 = vmatpush3.bf16.msra.mxu0 %v2881_v9  ;;  %1661 = vmatmul.mubr.f32.vlgmr.msra.gmra.mrb[12].mxu1 %v168_v10  ;;  %v2933_v9 = vpack.c.bf16 %v665_v3, %v664_v1  ;;  %v2903_v10 = vpack.c.bf16 %v651_v5, %v650_v4 }
  0xeb   : > { %2914 = vmatpush3.bf16.msra.mxu1 %v2913_v11  ;;  %2884 = vmatprep.subr.bf16.mxu0 %v2883_v12  ;;  %v634_v11 = vld [vmem:[%s4576_s1 + $0xe60] sm:$0xff]  ;;  %v635_v12 = vld [vmem:[%s4576_s1 + $0xe68] sm:$0xff] }
  0xec   : > { %2916 = vmatprep.subr.bf16.mxu1 %v2915_v16  ;;  %1730 = vmatprep.mubr.f32.mxu0 %v171_v22  ;;  %v667_v16 = vld [vmem:[%s4576_s1 + $0xf68] sm:$0xff]  ;;  %v685_v22 = vld [vmem:[%s4576_s1 + $0xff8] sm:$0xff] }
  0xed   : > { %1800 = vmatprep.mubr.f32.mxu1 %v173_v24  ;;  %v2937_v27 = vpack.c.bf16 %v667_v16, %v666_v13  ;;  %v2939_v31 = vpack.c.bf16 %v685_v22, %v684_v21 }
  0xee   : > { %2886 = vmatpush3.bf16.msra.mxu0 %v2885_v23 }
  0xef   : > { %2918 = vmatpush3.bf16.msra.mxu1 %v2917_v25  ;;  %2888 = vmatprep.subr.bf16.mxu0 %v2887_v26  ;;  %v2905_v25 = vpack.c.bf16 %v635_v12, %v634_v11 }
  0xf0   : > { %2920 = vmatprep.subr.bf16.mxu1 %v2919_v30  ;;  %v637_v30 = vld [vmem:[%s4576_s1 + $0xe78] sm:$0xff] }
  0xf1   : > { %v2909_v35 = vpack.c.bf16 %v637_v30, %v636_v29 }
  0xf2   : > { %2890 = vmatpush3.bf16.msra.mxu0 %v2889_v36  ;;  %v2941_v36 = vpack.c.bf16 %v669_v33, %v668_v32 }
  0xf3   : > { %2922 = vmatpush3.bf16.msra.mxu1 %v2921_v37  ;;  %2892 = vmatprep.subr.bf16.mxu0 %v2891_v38  ;;  %v170_v37 = vld [vmem:[%s3148_s12 + $0xe0] sm:$0xff]  ;;  %v172_v38 = vld [vmem:[%s3148_s12 + $0xf0] sm:$0xff]  ;;  %s1867_s12 = sshll.u32 %s4580_s10, 3 }
  0xf4   : > { %2924 = vmatprep.subr.bf16.mxu1 %v2923_v42  ;;  %s141_s13 = scalar_lea.vmem %s4577_s2, %s1867_s12 }
  0xf6   : > { %2894 = vmatpush3.bf16.msra.mxu0 %v2893_v48 }
  0xf7   : > { %2926 = vmatpush3.bf16.msra.mxu1 %v2925_v49  ;;  %2896 = vmatprep.subr.bf16.mxu0 %v2895_v50 }
  0xf8   : > { %2928 = vmatprep.subr.bf16.mxu1 %v2927_v54 }
  0xfa   : > { %2898 = vmatpush3.bf16.msra.mxu0 %v2897_v60 }
  0xfb   : > { %2930 = vmatpush3.bf16.msra.mxu1 %v2929_v61  ;;  %2900 = vmatprep.subr.bf16.mxu0 %v2899_v62 }
  0xfc   : > { %v1903_v14 = vpop.f32.mrb[0].mxu0  ;;  %2932 = vmatprep.subr.bf16.mxu1 %v2931_v2 }
  0xfd   : > { %v1938_v19 = vpop.f32.mrb[0].mxu1  ;;  %v1904_v20 = vpop.f32.mrb[1].mxu0 }
  0xfe   : > { %v1905_v23 = vadd.f32 %v1904_v20, %v1903_v14  ;;  %v1939_v24 = vpop.f32.mrb[1].mxu1  ;;  %2902 = vmatpush3.bf16.msra.mxu0 %v2901_v8 }
  0xff   : > { %v1940_v26 = vadd.f32 %v1939_v24, %v1938_v19  ;;  %2934 = vmatpush3.bf16.msra.mxu1 %v2933_v9  ;;  %2904 = vmatprep.subr.bf16.mxu0 %v2903_v10 }
 0x100   : > { %2936 = vmatprep.subr.bf16.mxu1 %v2935_v15 }
 0x101   : > { %v823_v34 = vadd.f32 %v1940_v26, %v1905_v23 }
 0x102   : > { %2906 = vmatpush3.bf16.msra.mxu0 %v2905_v25 }
 0x103   : > { %2938 = vmatpush3.bf16.msra.mxu1 %v2937_v27  ;;  %2908 = vmatprep.subr.bf16.mxu0 %v2907_v28 }
 0x104   : > { %2940 = vmatprep.subr.bf16.mxu1 %v2939_v31 }
 0x106   : > { %2910 = vmatpush3.bf16.msra.mxu0 %v2909_v35 }
 0x107   : > { %2942 = vmatpush3.bf16.msra.mxu1 %v2941_v36 }
 0x109   : > { %1731 = vmatmul.mubr.f32.vlgmr.msra.gmra.mrb[14].mxu0 %v170_v37 }
 0x10a   : > { %1801 = vmatmul.mubr.f32.vlgmr.msra.gmra.mrb[14].mxu1 %v172_v38 }
 0x11c   : > { %v1973_v39 = vpop.f32.mrb[2].mxu0 }
 0x11d   : > { %v1974_v40 = vpop.f32.mrb[3].mxu0  ;;  %v2008_v41 = vpop.f32.mrb[2].mxu1 }
 0x11e   : > { %v1975_v42 = vadd.f32 %v1974_v40, %v1973_v39  ;;  %v2009_v43 = vpop.f32.mrb[3].mxu1 }
 0x11f   : > { %v2010_v44 = vadd.f32 %v2009_v43, %v2008_v41 }
 0x120   : > { %v893_v45 = vadd.f32 %v1975_v42, %v823_v34 }
 0x122   : > { %v963_v46 = vadd.f32 %v2010_v44, %v893_v45 }
 0x13c   : > { %v2043_v47 = vpop.f32.mrb[4].mxu0 }
 0x13d   : > { %v2044_v48 = vpop.f32.mrb[5].mxu0  ;;  %v2078_v49 = vpop.f32.mrb[4].mxu1 }
 0x13e   : > { %v2045_v50 = vadd.f32 %v2044_v48, %v2043_v47  ;;  %v2079_v51 = vpop.f32.mrb[5].mxu1 }
 0x13f   : > { %v2080_v52 = vadd.f32 %v2079_v51, %v2078_v49 }
 0x140   : > { %v1033_v53 = vadd.f32 %v2045_v50, %v963_v46 }
 0x142   : > { %v1103_v54 = vadd.f32 %v2080_v52, %v1033_v53 }
 0x15c   : > { %v2113_v55 = vpop.f32.mrb[6].mxu0 }
 0x15d   : > { %v2114_v56 = vpop.f32.mrb[7].mxu0  ;;  %v2148_v57 = vpop.f32.mrb[6].mxu1 }
 0x15e   : > { %v2115_v58 = vadd.f32 %v2114_v56, %v2113_v55  ;;  %v2149_v59 = vpop.f32.mrb[7].mxu1 }
 0x15f   : > { %v2150_v60 = vadd.f32 %v2149_v59, %v2148_v57 }
 0x160   : > { %v1173_v61 = vadd.f32 %v2115_v58, %v1103_v54 }
 0x162   : > { %v1243_v62 = vadd.f32 %v2150_v60, %v1173_v61 }
 0x17c   : > { %v2183_v63 = vpop.f32.mrb[8].mxu0 }
 0x17d   : > { %v2184_v0 = vpop.f32.mrb[9].mxu0  ;;  %v2218_v1 = vpop.f32.mrb[8].mxu1 }
 0x17e   : > { %v2185_v2 = vadd.f32 %v2184_v0, %v2183_v63  ;;  %v2219_v3 = vpop.f32.mrb[9].mxu1 }
 0x17f   : > { %v2220_v4 = vadd.f32 %v2219_v3, %v2218_v1 }
 0x180   : > { %v1313_v5 = vadd.f32 %v2185_v2, %v1243_v62 }
 0x182   : > { %v1383_v6 = vadd.f32 %v2220_v4, %v1313_v5 }
 0x19c   : > { %v2253_v7 = vpop.f32.mrb[10].mxu0 }
 0x19d   : > { %v2254_v8 = vpop.f32.mrb[11].mxu0  ;;  %v2288_v9 = vpop.f32.mrb[10].mxu1 }
 0x19e   : > { %v2255_v10 = vadd.f32 %v2254_v8, %v2253_v7  ;;  %v2289_v11 = vpop.f32.mrb[11].mxu1 }
 0x19f   : > { %v2290_v12 = vadd.f32 %v2289_v11, %v2288_v9 }
 0x1a0   : > { %v1453_v13 = vadd.f32 %v2255_v10, %v1383_v6 }
 0x1a2   : > { %v1523_v14 = vadd.f32 %v2290_v12, %v1453_v13 }
 0x1bc   : > { %v2323_v15 = vpop.f32.mrb[12].mxu0 }
 0x1bd   : > { %v2324_v16 = vpop.f32.mrb[13].mxu0  ;;  %v2358_v17 = vpop.f32.mrb[12].mxu1 }
 0x1be   : > { %v2325_v18 = vadd.f32 %v2324_v16, %v2323_v15  ;;  %v2359_v19 = vpop.f32.mrb[13].mxu1 }
 0x1bf   : > { %v2360_v20 = vadd.f32 %v2359_v19, %v2358_v17 }
 0x1c0   : > { %v1593_v21 = vadd.f32 %v2325_v18, %v1523_v14 }
 0x1c2   : > { %v1663_v22 = vadd.f32 %v2360_v20, %v1593_v21 }
 0x1dc   : > { %v2393_v23 = vpop.f32.mrb[14].mxu0 }
 0x1dd   : > { %v2394_v24 = vpop.f32.mrb[15].mxu0  ;;  %v2428_v25 = vpop.f32.mrb[14].mxu1 }
 0x1de   : > { %v2395_v26 = vadd.f32 %v2394_v24, %v2393_v23  ;;  %v2429_v27 = vpop.f32.mrb[15].mxu1 }
 0x1df   : > { %v2430_v28 = vadd.f32 %v2429_v27, %v2428_v25 }
 0x1e0   : > { %v1733_v29 = vadd.f32 %v2395_v26, %v1663_v22 }
 0x1e2   : > { %v1803_v30 = vadd.f32 %v2430_v28, %v1733_v29 }
 0x1e4   : > { %1806 = vst [vmem:[%s141_s13] sm:$0xff] %v1803_v30 }
 0x1e5 PF: > { %s12_s9 = sadd.s32 1, %s2957_s9  }
 0x1e6   : > { %p9_p4 = scmp.ge.s32.totalorder %s12_s9, 6  }
 0x1e8   :  { %11 = sbr.rel (!%p9_p4) target bundleno = 1 (0x1), region = 58 }

</bundles_post_ra>
